<compile_context>
chip_gen: v7x
topology: tpu7x:2x2x1
jax: 0.10.0
libtpu: 0.0.40
codegen_flags: <defaults>
</compile_context>

<pallas_src>
import jax
import jax.numpy as jnp
import numpy as np
from jax import lax
from jax.experimental import pallas as pl
from jax.experimental.pallas import tpu as pltpu


_SUBLANES = 8  # f32 sublane group; batch is padded to a multiple of this.


def _full_block(shape):
    nd = len(shape)
    return pl.BlockSpec(shape, lambda i, _nd=nd: (0,) * _nd)


def _make_lstm_embedder_kernel(num_layers, hidden_dim, seq_len, b_pad):
    H = hidden_dim
    T = seq_len
    Bp = b_pad
    # Tunable: full unroll only for short sequences (keeps program size sane).
    unroll = True if T <= 16 else 4

    def kernel(*refs):
        x_ref = refs[0]                              # (T*Bp, input_dim) bf16, time-major
        layer_refs = refs[1:1 + 3 * num_layers]      # per layer: w_ih^T, w_hh^T, bias
        wfc_ref, bfc_ref, o_ref, pg_ref, seq_ref = refs[1 + 3 * num_layers:]

        src = x_ref[...]                             # (T*Bp, in_0) bf16
        h_top = None
        for l in range(num_layers):
            wih_ref = layer_refs[3 * l + 0]          # (in_l, 4H) bf16
            whh = layer_refs[3 * l + 1][...]         # (H, 4H) bf16 — small, resident for this layer
            b = layer_refs[3 * l + 2][...]           # (1, 4H) f32  (b_ih + b_hh folded)

            # Hoisted, batched input projection for ALL T steps of this layer:
            # one MXU matmul with M = T*Bp (instead of T serial M=Bp matmuls),
            # bias folded in.  The recurrence below only adds h @ W_hh.
            pg_ref[...] = (
                jnp.dot(src, wih_ref[...], preferred_element_type=jnp.float32) + b
            )                                        # (T*Bp, 4H) f32

            last = (l == num_layers - 1)

            def step(t, carry, _whh=whh, _last=last):
                h, c = carry                         # (Bp, H) f32
                row = t * Bp
                if not isinstance(row, int):
                    row = pl.multiple_of(row, _SUBLANES)
                gates = pg_ref[pl.ds(row, Bp), :] + jnp.dot(
                    h.astype(jnp.bfloat16), _whh,
                    preferred_element_type=jnp.float32)          # (Bp, 4H) f32
                # Two full-vreg transcendentals instead of four sliced ones.
                sig = jax.nn.sigmoid(gates)
                tnh = jnp.tanh(gates)
                i_g = sig[:, 0 * H:1 * H]            # PyTorch gate order: i, f, g, o
                f_g = sig[:, 1 * H:2 * H]
                g_g = tnh[:, 2 * H:3 * H]
                o_g = sig[:, 3 * H:4 * H]
                c_new = f_g * c + i_g * g_g
                h_new = o_g * jnp.tanh(c_new)
                if not _last:
                    # Store this layer's h sequence for the next layer's
                    # batched input projection.
                    seq_ref[pl.ds(row, Bp), :] = h_new
                return (h_new, c_new)

            zeros = jnp.zeros((Bp, H), jnp.float32)
            h_fin, _ = lax.fori_loop(0, T, step, (zeros, zeros), unroll=unroll)

            if last:
                h_top = h_fin
            else:
                src = seq_ref[...].astype(jnp.bfloat16)   # (T*Bp, H) for next layer

        # fc(lstm_out[:, -1, :]) == fc(h_top at the last time step).  Output is
        # lane-dense (out_dim multiple of 128 here -> unmasked stores).
        o_ref[...] = (
            jnp.dot(h_top.astype(jnp.bfloat16), wfc_ref[...],
                    preferred_element_type=jnp.float32) + bfc_ref[...]
        )

    return kernel


def prepare_lstm_embedder_params(layer_params, fc_weight, fc_bias):
    """One-time parameter prep: transposes, bias folding, bf16 casts.

    layer_params : list over layers of
        (w_ih (4H,in_l), w_hh (4H,H), b_ih (4H,), b_hh (4H,))  -- PyTorch layout.
    fc_weight    : (token_num*token_dim, H), fc_bias: (token_num*token_dim,)
    """
    prepped_layers = []
    for (w_ih, w_hh, b_ih, b_hh) in layer_params:
        prepped_layers.append((
            jnp.asarray(w_ih, jnp.float32).T.astype(jnp.bfloat16),        # (in_l, 4H)
            jnp.asarray(w_hh, jnp.float32).T.astype(jnp.bfloat16),        # (H, 4H)
            (jnp.asarray(b_ih, jnp.float32)
             + jnp.asarray(b_hh, jnp.float32))[None, :],                  # (1, 4H) f32
        ))
    wfc = jnp.asarray(fc_weight, jnp.float32).T.astype(jnp.bfloat16)      # (H, out_dim)
    bfc = jnp.asarray(fc_bias, jnp.float32)[None, :]                      # (1, out_dim)
    return tuple(prepped_layers), wfc, bfc


def lstm_embedder_forward(x, prepared_params, output_token_num, output_token_dim):
    """LstmEmbedder.forward (eval, unidirectional).

    x : (B, T, input_dim) float32
    prepared_params : output of prepare_lstm_embedder_params
    returns : (B, output_token_num, output_token_dim) float32
    """
    prepped_layers, wfc, bfc = prepared_params
    B, T, input_dim = x.shape
    num_layers = len(prepped_layers)
    H = prepped_layers[0][1].shape[0]
    out_dim = wfc.shape[1]
    assert out_dim == output_token_num * output_token_dim

    # Pad batch to a full sublane group (correctness-neutral: padded rows are
    # computed but discarded), then flatten to time-major 2D so every in-kernel
    # matmul / slice is 2D and sublane-aligned.
    Bp = max(_SUBLANES, ((B + _SUBLANES - 1) // _SUBLANES) * _SUBLANES)
    x32 = jnp.asarray(x, jnp.float32)
    if Bp != B:
        x32 = jnp.pad(x32, ((0, Bp - B), (0, 0), (0, 0)))
    x_tm = jnp.transpose(x32, (1, 0, 2)).reshape(T * Bp, input_dim).astype(jnp.bfloat16)

    kernel_inputs = [x_tm]
    for (wih, whh, b) in prepped_layers:
        kernel_inputs += [wih, whh, b]
    kernel_inputs += [wfc, bfc]

    in_specs = [_full_block(a.shape) for a in kernel_inputs]

    out = pl.pallas_call(
        _make_lstm_embedder_kernel(num_layers, H, T, Bp),
        out_shape=jax.ShapeDtypeStruct((Bp, out_dim), jnp.float32),
        grid_spec=pltpu.PrefetchScalarGridSpec(
            num_scalar_prefetch=0,
            grid=(1,),
            in_specs=in_specs,
            out_specs=_full_block((Bp, out_dim)),
            scratch_shapes=[
                pltpu.VMEM((T * Bp, 4 * H), jnp.float32),  # pre-gates of current layer
                pltpu.VMEM((T * Bp, H), jnp.float32),      # h-sequence feeding next layer
            ],
        ),
        compiler_params=pltpu.CompilerParams(
            dimension_semantics=("arbitrary",),
        ),
    )(*kernel_inputs)
    return out[:B].reshape(B, output_token_num, output_token_dim)


if __name__ == "__main__":
    # Small shapes consistent with the module.
    B, T = 2, 8
    input_dim, H, num_layers = 32, 32, 2          # 4H = 128 -> lane-dense gates
    token_num, token_dim = 4, 32                  # fc out = 128 -> lane-dense store

    key = jax.random.PRNGKey(0)
    keys = jax.random.split(key, 1 + 4 * num_layers + 2)
    k_iter = iter(keys)

    x = jax.random.normal(next(k_iter), (B, T, input_dim), dtype=jnp.float32)

    def u(k, shape, scale=0.2):
        return jax.random.uniform(k, shape, jnp.float32, -scale, scale)

    layer_params = []
    for l in range(num_layers):
        in_l = input_dim if l == 0 else H
        layer_params.append((
            u(next(k_iter), (4 * H, in_l)),   # weight_ih_l{l}
            u(next(k_iter), (4 * H, H)),      # weight_hh_l{l}
            u(next(k_iter), (4 * H,)),        # bias_ih_l{l}
            u(next(k_iter), (4 * H,)),        # bias_hh_l{l}
        ))
    fc_w = u(next(k_iter), (token_num * token_dim, H))
    fc_b = u(next(k_iter), (token_num * token_dim,))

    prepared = prepare_lstm_embedder_params(layer_params, fc_w, fc_b)   # one-time
    out = lstm_embedder_forward(x, prepared, token_num, token_dim)
    out = jax.block_until_ready(out)
    assert out.shape == (B, token_num, token_dim)

    # Pure-numpy float32 reference of the PyTorch forward (same math, same gate order).
    def ref_forward():
        def sig(v):
            return 1.0 / (1.0 + np.exp(-v))
        seq = np.asarray(x)
        for (w_ih, w_hh, b_ih, b_hh) in layer_params:
            w_ih, w_hh = np.asarray(w_ih), np.asarray(w_hh)
            b_ih, b_hh = np.asarray(b_ih), np.asarray(b_hh)
            h = np.zeros((B, H), np.float32)
            c = np.zeros((B, H), np.float32)
            outs = []
            for t in range(T):
                gates = seq[:, t, :] @ w_ih.T + b_ih + h @ w_hh.T + b_hh
                i_g = sig(gates[:, 0:H])
                f_g = sig(gates[:, H:2 * H])
                g_g = np.tanh(gates[:, 2 * H:3 * H])
                o_g = sig(gates[:, 3 * H:4 * H])
                c = f_g * c + i_g * g_g
                h = o_g * np.tanh(c)
                outs.append(h)
            seq = np.stack(outs, axis=1)
        o = seq[:, -1, :] @ np.asarray(fc_w).T + np.asarray(fc_b)
        return o.reshape(B, token_num, token_dim)

    ref = ref_forward()
    # Tolerance covers the bf16 single-pass MXU matmuls (recurrence stays f32).
    np.testing.assert_allclose(np.asarray(out), ref, rtol=2e-2, atol=2e-2)
    print("KERNEL_OK")
</pallas_src>

<mosaic_0001>
module attributes {stable_mosaic.version = 11 : i64} {
  func.func @kernel(%arg0: i32, %arg1: memref<64x32xbf16, #tpu.memory_space<vmem>>, %arg2: memref<32x128xbf16, #tpu.memory_space<vmem>>, %arg3: memref<32x128xbf16, #tpu.memory_space<vmem>>, %arg4: memref<1x128xf32, #tpu.memory_space<vmem>>, %arg5: memref<32x128xbf16, #tpu.memory_space<vmem>>, %arg6: memref<32x128xbf16, #tpu.memory_space<vmem>>, %arg7: memref<1x128xf32, #tpu.memory_space<vmem>>, %arg8: memref<32x128xbf16, #tpu.memory_space<vmem>>, %arg9: memref<1x128xf32, #tpu.memory_space<vmem>>, %arg10: memref<8x128xf32, #tpu.memory_space<vmem>>, %arg11: memref<64x128xf32, #tpu.memory_space<vmem>>, %arg12: memref<64x32xf32, #tpu.memory_space<vmem>>) attributes {dimension_semantics = [#tpu.dimension_semantics<arbitrary>], iteration_bounds = array<i64: 1>, scalar_prefetch = 0 : i64, scratch_operands = 2 : i64, tpu.core_type = #tpu.core_type<tc>, window_params = [{pipeline_mode = #tpu.pipeline_mode<synchronous>, transform_indices = @transform_0, window_bounds = array<i64: 64, 32>}, {pipeline_mode = #tpu.pipeline_mode<synchronous>, transform_indices = @transform_1, window_bounds = array<i64: 32, 128>}, {pipeline_mode = #tpu.pipeline_mode<synchronous>, transform_indices = @transform_2, window_bounds = array<i64: 32, 128>}, {pipeline_mode = #tpu.pipeline_mode<synchronous>, transform_indices = @transform_3, window_bounds = array<i64: 1, 128>}, {pipeline_mode = #tpu.pipeline_mode<synchronous>, transform_indices = @transform_4, window_bounds = array<i64: 32, 128>}, {pipeline_mode = #tpu.pipeline_mode<synchronous>, transform_indices = @transform_5, window_bounds = array<i64: 32, 128>}, {pipeline_mode = #tpu.pipeline_mode<synchronous>, transform_indices = @transform_6, window_bounds = array<i64: 1, 128>}, {pipeline_mode = #tpu.pipeline_mode<synchronous>, transform_indices = @transform_7, window_bounds = array<i64: 32, 128>}, {pipeline_mode = #tpu.pipeline_mode<synchronous>, transform_indices = @transform_8, window_bounds = array<i64: 1, 128>}, {pipeline_mode = #tpu.pipeline_mode<synchronous>, transform_indices = @transform_9, window_bounds = array<i64: 8, 128>}]} {
    %c0 = arith.constant 0 : index
    %c0_0 = arith.constant 0 : index
    %0 = vector.load %arg1[%c0, %c0_0] : memref<64x32xbf16, #tpu.memory_space<vmem>>, vector<64x32xbf16>
    %c0_1 = arith.constant 0 : index
    %c0_2 = arith.constant 0 : index
    %1 = vector.load %arg3[%c0_1, %c0_2] : memref<32x128xbf16, #tpu.memory_space<vmem>>, vector<32x128xbf16>
    %c0_3 = arith.constant 0 : index
    %c0_4 = arith.constant 0 : index
    %2 = vector.load %arg4[%c0_3, %c0_4] : memref<1x128xf32, #tpu.memory_space<vmem>>, vector<1x128xf32>
    %c0_5 = arith.constant 0 : index
    %c0_6 = arith.constant 0 : index
    %3 = vector.load %arg2[%c0_5, %c0_6] : memref<32x128xbf16, #tpu.memory_space<vmem>>, vector<32x128xbf16>
    %cst = arith.constant dense<0.000000e+00> : vector<64x128xf32>
    %4 = tpu.matmul %0, %3, %cst {dimension_numbers = #tpu.dot_dimension_numbers<[1], [0], [0], [1], [0, 0, 1, 1], [], []>} : vector<64x32xbf16>, vector<32x128xbf16>, vector<64x128xf32> -> vector<64x128xf32>
    %5 = vector.broadcast %2 : vector<1x128xf32> to vector<64x128xf32>
    %6 = arith.addf %4, %5 : vector<64x128xf32>
    %c0_7 = arith.constant 0 : index
    %c0_8 = arith.constant 0 : index
    %7 = vector.load %arg11[%c0_7, %c0_8] : memref<64x128xf32, #tpu.memory_space<vmem>>, vector<64x128xf32>
    tpu.vector_store %arg11[%c0_7, %c0_8], %6 {strides = array<i32>} : memref<64x128xf32, #tpu.memory_space<vmem>>, vector<64x128xf32>,
    %cst_9 = arith.constant 0.000000e+00 : f32
    %8 = vector.broadcast %cst_9 : f32 to vector<8x32xf32>
    %c0_i32 = arith.constant 0 : i32
    %c8_i32 = arith.constant 8 : i32
    %9 = arith.muli %c0_i32, %c8_i32 : i32
    %10 = tpu.assume_multiple %9, 8 : i32
    %11 = arith.index_cast %10 : i32 to index
    %c0_10 = arith.constant 0 : index
    %12 = vector.load %arg11[%11, %c0_10] : memref<64x128xf32, #tpu.memory_space<vmem>>, vector<8x128xf32>
    %13 = arith.truncf %8 : vector<8x32xf32> to vector<8x32xbf16>
    %cst_11 = arith.constant dense<0.000000e+00> : vector<8x128xf32>
    %14 = tpu.matmul %13, %1, %cst_11 {dimension_numbers = #tpu.dot_dimension_numbers<[1], [0], [0], [1], [0, 0, 1, 1], [], []>} : vector<8x32xbf16>, vector<32x128xbf16>, vector<8x128xf32> -> vector<8x128xf32>
    %15 = arith.addf %12, %14 : vector<8x128xf32>
    %16 = arith.negf %15 : vector<8x128xf32>
    %17 = math.exp %16 : vector<8x128xf32>
    %cst_12 = arith.constant 1.000000e+00 : f32
    %18 = vector.broadcast %cst_12 : f32 to vector<8x128xf32>
    %19 = arith.addf %18, %17 : vector<8x128xf32>
    %20 = arith.divf %18, %19 : vector<8x128xf32>
    %21 = math.tanh %15 : vector<8x128xf32>
    %22 = vector.extract_strided_slice %20 {offsets = [0, 0], sizes = [8, 32], strides = [1, 1]} : vector<8x128xf32> to vector<8x32xf32>
    %23 = vector.extract_strided_slice %20 {offsets = [0, 32], sizes = [8, 32], strides = [1, 1]} : vector<8x128xf32> to vector<8x32xf32>
    %24 = vector.extract_strided_slice %21 {offsets = [0, 64], sizes = [8, 32], strides = [1, 1]} : vector<8x128xf32> to vector<8x32xf32>
    %25 = vector.extract_strided_slice %20 {offsets = [0, 96], sizes = [8, 32], strides = [1, 1]} : vector<8x128xf32> to vector<8x32xf32>
    %26 = arith.mulf %23, %8 : vector<8x32xf32>
    %27 = arith.mulf %22, %24 : vector<8x32xf32>
    %28 = arith.addf %26, %27 : vector<8x32xf32>
    %29 = math.tanh %28 : vector<8x32xf32>
    %30 = arith.mulf %25, %29 : vector<8x32xf32>
    %31 = arith.index_cast %10 : i32 to index
    %c0_13 = arith.constant 0 : index
    %32 = vector.load %arg12[%31, %c0_13] : memref<64x32xf32, #tpu.memory_space<vmem>>, vector<8x32xf32>
    tpu.vector_store %arg12[%31, %c0_13], %30 {strides = array<i32>} : memref<64x32xf32, #tpu.memory_space<vmem>>, vector<8x32xf32>,
    %c1_i32 = arith.constant 1 : i32
    %c8_i32_14 = arith.constant 8 : i32
    %33 = arith.muli %c1_i32, %c8_i32_14 : i32
    %34 = tpu.assume_multiple %33, 8 : i32
    %35 = arith.index_cast %34 : i32 to index
    %c0_15 = arith.constant 0 : index
    %36 = vector.load %arg11[%35, %c0_15] : memref<64x128xf32, #tpu.memory_space<vmem>>, vector<8x128xf32>
    %37 = arith.truncf %30 : vector<8x32xf32> to vector<8x32xbf16>
    %cst_16 = arith.constant dense<0.000000e+00> : vector<8x128xf32>
    %38 = tpu.matmul %37, %1, %cst_16 {dimension_numbers = #tpu.dot_dimension_numbers<[1], [0], [0], [1], [0, 0, 1, 1], [], []>} : vector<8x32xbf16>, vector<32x128xbf16>, vector<8x128xf32> -> vector<8x128xf32>
    %39 = arith.addf %36, %38 : vector<8x128xf32>
    %40 = arith.negf %39 : vector<8x128xf32>
    %41 = math.exp %40 : vector<8x128xf32>
    %cst_17 = arith.constant 1.000000e+00 : f32
    %42 = vector.broadcast %cst_17 : f32 to vector<8x128xf32>
    %43 = arith.addf %42, %41 : vector<8x128xf32>
    %44 = arith.divf %42, %43 : vector<8x128xf32>
    %45 = math.tanh %39 : vector<8x128xf32>
    %46 = vector.extract_strided_slice %44 {offsets = [0, 0], sizes = [8, 32], strides = [1, 1]} : vector<8x128xf32> to vector<8x32xf32>
    %47 = vector.extract_strided_slice %44 {offsets = [0, 32], sizes = [8, 32], strides = [1, 1]} : vector<8x128xf32> to vector<8x32xf32>
    %48 = vector.extract_strided_slice %45 {offsets = [0, 64], sizes = [8, 32], strides = [1, 1]} : vector<8x128xf32> to vector<8x32xf32>
    %49 = vector.extract_strided_slice %44 {offsets = [0, 96], sizes = [8, 32], strides = [1, 1]} : vector<8x128xf32> to vector<8x32xf32>
    %50 = arith.mulf %47, %28 : vector<8x32xf32>
    %51 = arith.mulf %46, %48 : vector<8x32xf32>
    %52 = arith.addf %50, %51 : vector<8x32xf32>
    %53 = math.tanh %52 : vector<8x32xf32>
    %54 = arith.mulf %49, %53 : vector<8x32xf32>
    %55 = arith.index_cast %34 : i32 to index
    %c0_18 = arith.constant 0 : index
    %56 = vector.load %arg12[%55, %c0_18] : memref<64x32xf32, #tpu.memory_space<vmem>>, vector<8x32xf32>
    tpu.vector_store %arg12[%55, %c0_18], %54 {strides = array<i32>} : memref<64x32xf32, #tpu.memory_space<vmem>>, vector<8x32xf32>,
    %c2_i32 = arith.constant 2 : i32
    %c8_i32_19 = arith.constant 8 : i32
    %57 = arith.muli %c2_i32, %c8_i32_19 : i32
    %58 = tpu.assume_multiple %57, 8 : i32
    %59 = arith.index_cast %58 : i32 to index
    %c0_20 = arith.constant 0 : index
    %60 = vector.load %arg11[%59, %c0_20] : memref<64x128xf32, #tpu.memory_space<vmem>>, vector<8x128xf32>
    %61 = arith.truncf %54 : vector<8x32xf32> to vector<8x32xbf16>
    %cst_21 = arith.constant dense<0.000000e+00> : vector<8x128xf32>
    %62 = tpu.matmul %61, %1, %cst_21 {dimension_numbers = #tpu.dot_dimension_numbers<[1], [0], [0], [1], [0, 0, 1, 1], [], []>} : vector<8x32xbf16>, vector<32x128xbf16>, vector<8x128xf32> -> vector<8x128xf32>
    %63 = arith.addf %60, %62 : vector<8x128xf32>
    %64 = arith.negf %63 : vector<8x128xf32>
    %65 = math.exp %64 : vector<8x128xf32>
    %cst_22 = arith.constant 1.000000e+00 : f32
    %66 = vector.broadcast %cst_22 : f32 to vector<8x128xf32>
    %67 = arith.addf %66, %65 : vector<8x128xf32>
    %68 = arith.divf %66, %67 : vector<8x128xf32>
    %69 = math.tanh %63 : vector<8x128xf32>
    %70 = vector.extract_strided_slice %68 {offsets = [0, 0], sizes = [8, 32], strides = [1, 1]} : vector<8x128xf32> to vector<8x32xf32>
    %71 = vector.extract_strided_slice %68 {offsets = [0, 32], sizes = [8, 32], strides = [1, 1]} : vector<8x128xf32> to vector<8x32xf32>
    %72 = vector.extract_strided_slice %69 {offsets = [0, 64], sizes = [8, 32], strides = [1, 1]} : vector<8x128xf32> to vector<8x32xf32>
    %73 = vector.extract_strided_slice %68 {offsets = [0, 96], sizes = [8, 32], strides = [1, 1]} : vector<8x128xf32> to vector<8x32xf32>
    %74 = arith.mulf %71, %52 : vector<8x32xf32>
    %75 = arith.mulf %70, %72 : vector<8x32xf32>
    %76 = arith.addf %74, %75 : vector<8x32xf32>
    %77 = math.tanh %76 : vector<8x32xf32>
    %78 = arith.mulf %73, %77 : vector<8x32xf32>
    %79 = arith.index_cast %58 : i32 to index
    %c0_23 = arith.constant 0 : index
    %80 = vector.load %arg12[%79, %c0_23] : memref<64x32xf32, #tpu.memory_space<vmem>>, vector<8x32xf32>
    tpu.vector_store %arg12[%79, %c0_23], %78 {strides = array<i32>} : memref<64x32xf32, #tpu.memory_space<vmem>>, vector<8x32xf32>,
    %c3_i32 = arith.constant 3 : i32
    %c8_i32_24 = arith.constant 8 : i32
    %81 = arith.muli %c3_i32, %c8_i32_24 : i32
    %82 = tpu.assume_multiple %81, 8 : i32
    %83 = arith.index_cast %82 : i32 to index
    %c0_25 = arith.constant 0 : index
    %84 = vector.load %arg11[%83, %c0_25] : memref<64x128xf32, #tpu.memory_space<vmem>>, vector<8x128xf32>
    %85 = arith.truncf %78 : vector<8x32xf32> to vector<8x32xbf16>
    %cst_26 = arith.constant dense<0.000000e+00> : vector<8x128xf32>
    %86 = tpu.matmul %85, %1, %cst_26 {dimension_numbers = #tpu.dot_dimension_numbers<[1], [0], [0], [1], [0, 0, 1, 1], [], []>} : vector<8x32xbf16>, vector<32x128xbf16>, vector<8x128xf32> -> vector<8x128xf32>
    %87 = arith.addf %84, %86 : vector<8x128xf32>
    %88 = arith.negf %87 : vector<8x128xf32>
    %89 = math.exp %88 : vector<8x128xf32>
    %cst_27 = arith.constant 1.000000e+00 : f32
    %90 = vector.broadcast %cst_27 : f32 to vector<8x128xf32>
    %91 = arith.addf %90, %89 : vector<8x128xf32>
    %92 = arith.divf %90, %91 : vector<8x128xf32>
    %93 = math.tanh %87 : vector<8x128xf32>
    %94 = vector.extract_strided_slice %92 {offsets = [0, 0], sizes = [8, 32], strides = [1, 1]} : vector<8x128xf32> to vector<8x32xf32>
    %95 = vector.extract_strided_slice %92 {offsets = [0, 32], sizes = [8, 32], strides = [1, 1]} : vector<8x128xf32> to vector<8x32xf32>
    %96 = vector.extract_strided_slice %93 {offsets = [0, 64], sizes = [8, 32], strides = [1, 1]} : vector<8x128xf32> to vector<8x32xf32>
    %97 = vector.extract_strided_slice %92 {offsets = [0, 96], sizes = [8, 32], strides = [1, 1]} : vector<8x128xf32> to vector<8x32xf32>
    %98 = arith.mulf %95, %76 : vector<8x32xf32>
    %99 = arith.mulf %94, %96 : vector<8x32xf32>
    %100 = arith.addf %98, %99 : vector<8x32xf32>
    %101 = math.tanh %100 : vector<8x32xf32>
    %102 = arith.mulf %97, %101 : vector<8x32xf32>
    %103 = arith.index_cast %82 : i32 to index
    %c0_28 = arith.constant 0 : index
    %104 = vector.load %arg12[%103, %c0_28] : memref<64x32xf32, #tpu.memory_space<vmem>>, vector<8x32xf32>
    tpu.vector_store %arg12[%103, %c0_28], %102 {strides = array<i32>} : memref<64x32xf32, #tpu.memory_space<vmem>>, vector<8x32xf32>,
    %c4_i32 = arith.constant 4 : i32
    %c8_i32_29 = arith.constant 8 : i32
    %105 = arith.muli %c4_i32, %c8_i32_29 : i32
    %106 = tpu.assume_multiple %105, 8 : i32
    %107 = arith.index_cast %106 : i32 to index
    %c0_30 = arith.constant 0 : index
    %108 = vector.load %arg11[%107, %c0_30] : memref<64x128xf32, #tpu.memory_space<vmem>>, vector<8x128xf32>
    %109 = arith.truncf %102 : vector<8x32xf32> to vector<8x32xbf16>
    %cst_31 = arith.constant dense<0.000000e+00> : vector<8x128xf32>
    %110 = tpu.matmul %109, %1, %cst_31 {dimension_numbers = #tpu.dot_dimension_numbers<[1], [0], [0], [1], [0, 0, 1, 1], [], []>} : vector<8x32xbf16>, vector<32x128xbf16>, vector<8x128xf32> -> vector<8x128xf32>
    %111 = arith.addf %108, %110 : vector<8x128xf32>
    %112 = arith.negf %111 : vector<8x128xf32>
    %113 = math.exp %112 : vector<8x128xf32>
    %cst_32 = arith.constant 1.000000e+00 : f32
    %114 = vector.broadcast %cst_32 : f32 to vector<8x128xf32>
    %115 = arith.addf %114, %113 : vector<8x128xf32>
    %116 = arith.divf %114, %115 : vector<8x128xf32>
    %117 = math.tanh %111 : vector<8x128xf32>
    %118 = vector.extract_strided_slice %116 {offsets = [0, 0], sizes = [8, 32], strides = [1, 1]} : vector<8x128xf32> to vector<8x32xf32>
    %119 = vector.extract_strided_slice %116 {offsets = [0, 32], sizes = [8, 32], strides = [1, 1]} : vector<8x128xf32> to vector<8x32xf32>
    %120 = vector.extract_strided_slice %117 {offsets = [0, 64], sizes = [8, 32], strides = [1, 1]} : vector<8x128xf32> to vector<8x32xf32>
    %121 = vector.extract_strided_slice %116 {offsets = [0, 96], sizes = [8, 32], strides = [1, 1]} : vector<8x128xf32> to vector<8x32xf32>
    %122 = arith.mulf %119, %100 : vector<8x32xf32>
    %123 = arith.mulf %118, %120 : vector<8x32xf32>
    %124 = arith.addf %122, %123 : vector<8x32xf32>
    %125 = math.tanh %124 : vector<8x32xf32>
    %126 = arith.mulf %121, %125 : vector<8x32xf32>
    %127 = arith.index_cast %106 : i32 to index
    %c0_33 = arith.constant 0 : index
    %128 = vector.load %arg12[%127, %c0_33] : memref<64x32xf32, #tpu.memory_space<vmem>>, vector<8x32xf32>
    tpu.vector_store %arg12[%127, %c0_33], %126 {strides = array<i32>} : memref<64x32xf32, #tpu.memory_space<vmem>>, vector<8x32xf32>,
    %c5_i32 = arith.constant 5 : i32
    %c8_i32_34 = arith.constant 8 : i32
    %129 = arith.muli %c5_i32, %c8_i32_34 : i32
    %130 = tpu.assume_multiple %129, 8 : i32
    %131 = arith.index_cast %130 : i32 to index
    %c0_35 = arith.constant 0 : index
    %132 = vector.load %arg11[%131, %c0_35] : memref<64x128xf32, #tpu.memory_space<vmem>>, vector<8x128xf32>
    %133 = arith.truncf %126 : vector<8x32xf32> to vector<8x32xbf16>
    %cst_36 = arith.constant dense<0.000000e+00> : vector<8x128xf32>
    %134 = tpu.matmul %133, %1, %cst_36 {dimension_numbers = #tpu.dot_dimension_numbers<[1], [0], [0], [1], [0, 0, 1, 1], [], []>} : vector<8x32xbf16>, vector<32x128xbf16>, vector<8x128xf32> -> vector<8x128xf32>
    %135 = arith.addf %132, %134 : vector<8x128xf32>
    %136 = arith.negf %135 : vector<8x128xf32>
    %137 = math.exp %136 : vector<8x128xf32>
    %cst_37 = arith.constant 1.000000e+00 : f32
    %138 = vector.broadcast %cst_37 : f32 to vector<8x128xf32>
    %139 = arith.addf %138, %137 : vector<8x128xf32>
    %140 = arith.divf %138, %139 : vector<8x128xf32>
    %141 = math.tanh %135 : vector<8x128xf32>
    %142 = vector.extract_strided_slice %140 {offsets = [0, 0], sizes = [8, 32], strides = [1, 1]} : vector<8x128xf32> to vector<8x32xf32>
    %143 = vector.extract_strided_slice %140 {offsets = [0, 32], sizes = [8, 32], strides = [1, 1]} : vector<8x128xf32> to vector<8x32xf32>
    %144 = vector.extract_strided_slice %141 {offsets = [0, 64], sizes = [8, 32], strides = [1, 1]} : vector<8x128xf32> to vector<8x32xf32>
    %145 = vector.extract_strided_slice %140 {offsets = [0, 96], sizes = [8, 32], strides = [1, 1]} : vector<8x128xf32> to vector<8x32xf32>
    %146 = arith.mulf %143, %124 : vector<8x32xf32>
    %147 = arith.mulf %142, %144 : vector<8x32xf32>
    %148 = arith.addf %146, %147 : vector<8x32xf32>
    %149 = math.tanh %148 : vector<8x32xf32>
    %150 = arith.mulf %145, %149 : vector<8x32xf32>
    %151 = arith.index_cast %130 : i32 to index
    %c0_38 = arith.constant 0 : index
    %152 = vector.load %arg12[%151, %c0_38] : memref<64x32xf32, #tpu.memory_space<vmem>>, vector<8x32xf32>
    tpu.vector_store %arg12[%151, %c0_38], %150 {strides = array<i32>} : memref<64x32xf32, #tpu.memory_space<vmem>>, vector<8x32xf32>,
    %c6_i32 = arith.constant 6 : i32
    %c8_i32_39 = arith.constant 8 : i32
    %153 = arith.muli %c6_i32, %c8_i32_39 : i32
    %154 = tpu.assume_multiple %153, 8 : i32
    %155 = arith.index_cast %154 : i32 to index
    %c0_40 = arith.constant 0 : index
    %156 = vector.load %arg11[%155, %c0_40] : memref<64x128xf32, #tpu.memory_space<vmem>>, vector<8x128xf32>
    %157 = arith.truncf %150 : vector<8x32xf32> to vector<8x32xbf16>
    %cst_41 = arith.constant dense<0.000000e+00> : vector<8x128xf32>
    %158 = tpu.matmul %157, %1, %cst_41 {dimension_numbers = #tpu.dot_dimension_numbers<[1], [0], [0], [1], [0, 0, 1, 1], [], []>} : vector<8x32xbf16>, vector<32x128xbf16>, vector<8x128xf32> -> vector<8x128xf32>
    %159 = arith.addf %156, %158 : vector<8x128xf32>
    %160 = arith.negf %159 : vector<8x128xf32>
    %161 = math.exp %160 : vector<8x128xf32>
    %cst_42 = arith.constant 1.000000e+00 : f32
    %162 = vector.broadcast %cst_42 : f32 to vector<8x128xf32>
    %163 = arith.addf %162, %161 : vector<8x128xf32>
    %164 = arith.divf %162, %163 : vector<8x128xf32>
    %165 = math.tanh %159 : vector<8x128xf32>
    %166 = vector.extract_strided_slice %164 {offsets = [0, 0], sizes = [8, 32], strides = [1, 1]} : vector<8x128xf32> to vector<8x32xf32>
    %167 = vector.extract_strided_slice %164 {offsets = [0, 32], sizes = [8, 32], strides = [1, 1]} : vector<8x128xf32> to vector<8x32xf32>
    %168 = vector.extract_strided_slice %165 {offsets = [0, 64], sizes = [8, 32], strides = [1, 1]} : vector<8x128xf32> to vector<8x32xf32>
    %169 = vector.extract_strided_slice %164 {offsets = [0, 96], sizes = [8, 32], strides = [1, 1]} : vector<8x128xf32> to vector<8x32xf32>
    %170 = arith.mulf %167, %148 : vector<8x32xf32>
    %171 = arith.mulf %166, %168 : vector<8x32xf32>
    %172 = arith.addf %170, %171 : vector<8x32xf32>
    %173 = math.tanh %172 : vector<8x32xf32>
    %174 = arith.mulf %169, %173 : vector<8x32xf32>
    %175 = arith.index_cast %154 : i32 to index
    %c0_43 = arith.constant 0 : index
    %176 = vector.load %arg12[%175, %c0_43] : memref<64x32xf32, #tpu.memory_space<vmem>>, vector<8x32xf32>
    tpu.vector_store %arg12[%175, %c0_43], %174 {strides = array<i32>} : memref<64x32xf32, #tpu.memory_space<vmem>>, vector<8x32xf32>,
    %c7_i32 = arith.constant 7 : i32
    %c8_i32_44 = arith.constant 8 : i32
    %177 = arith.muli %c7_i32, %c8_i32_44 : i32
    %178 = tpu.assume_multiple %177, 8 : i32
    %179 = arith.index_cast %178 : i32 to index
    %c0_45 = arith.constant 0 : index
    %180 = vector.load %arg11[%179, %c0_45] : memref<64x128xf32, #tpu.memory_space<vmem>>, vector<8x128xf32>
    %181 = arith.truncf %174 : vector<8x32xf32> to vector<8x32xbf16>
    %cst_46 = arith.constant dense<0.000000e+00> : vector<8x128xf32>
    %182 = tpu.matmul %181, %1, %cst_46 {dimension_numbers = #tpu.dot_dimension_numbers<[1], [0], [0], [1], [0, 0, 1, 1], [], []>} : vector<8x32xbf16>, vector<32x128xbf16>, vector<8x128xf32> -> vector<8x128xf32>
    %183 = arith.addf %180, %182 : vector<8x128xf32>
    %184 = arith.negf %183 : vector<8x128xf32>
    %185 = math.exp %184 : vector<8x128xf32>
    %cst_47 = arith.constant 1.000000e+00 : f32
    %186 = vector.broadcast %cst_47 : f32 to vector<8x128xf32>
    %187 = arith.addf %186, %185 : vector<8x128xf32>
    %188 = arith.divf %186, %187 : vector<8x128xf32>
    %189 = math.tanh %183 : vector<8x128xf32>
    %190 = vector.extract_strided_slice %188 {offsets = [0, 0], sizes = [8, 32], strides = [1, 1]} : vector<8x128xf32> to vector<8x32xf32>
    %191 = vector.extract_strided_slice %188 {offsets = [0, 32], sizes = [8, 32], strides = [1, 1]} : vector<8x128xf32> to vector<8x32xf32>
    %192 = vector.extract_strided_slice %189 {offsets = [0, 64], sizes = [8, 32], strides = [1, 1]} : vector<8x128xf32> to vector<8x32xf32>
    %193 = vector.extract_strided_slice %188 {offsets = [0, 96], sizes = [8, 32], strides = [1, 1]} : vector<8x128xf32> to vector<8x32xf32>
    %194 = arith.mulf %191, %172 : vector<8x32xf32>
    %195 = arith.mulf %190, %192 : vector<8x32xf32>
    %196 = arith.addf %194, %195 : vector<8x32xf32>
    %197 = math.tanh %196 : vector<8x32xf32>
    %198 = arith.mulf %193, %197 : vector<8x32xf32>
    %199 = arith.index_cast %178 : i32 to index
    %c0_48 = arith.constant 0 : index
    %200 = vector.load %arg12[%199, %c0_48] : memref<64x32xf32, #tpu.memory_space<vmem>>, vector<8x32xf32>
    tpu.vector_store %arg12[%199, %c0_48], %198 {strides = array<i32>} : memref<64x32xf32, #tpu.memory_space<vmem>>, vector<8x32xf32>,
    %c8_i32_49 = arith.constant 8 : i32
    %c0_50 = arith.constant 0 : index
    %c0_51 = arith.constant 0 : index
    %201 = vector.load %arg12[%c0_50, %c0_51] : memref<64x32xf32, #tpu.memory_space<vmem>>, vector<64x32xf32>
    %202 = arith.truncf %201 : vector<64x32xf32> to vector<64x32xbf16>
    %c0_52 = arith.constant 0 : index
    %c0_53 = arith.constant 0 : index
    %203 = vector.load %arg6[%c0_52, %c0_53] : memref<32x128xbf16, #tpu.memory_space<vmem>>, vector<32x128xbf16>
    %c0_54 = arith.constant 0 : index
    %c0_55 = arith.constant 0 : index
    %204 = vector.load %arg7[%c0_54, %c0_55] : memref<1x128xf32, #tpu.memory_space<vmem>>, vector<1x128xf32>
    %c0_56 = arith.constant 0 : index
    %c0_57 = arith.constant 0 : index
    %205 = vector.load %arg5[%c0_56, %c0_57] : memref<32x128xbf16, #tpu.memory_space<vmem>>, vector<32x128xbf16>
    %cst_58 = arith.constant dense<0.000000e+00> : vector<64x128xf32>
    %206 = tpu.matmul %202, %205, %cst_58 {dimension_numbers = #tpu.dot_dimension_numbers<[1], [0], [0], [1], [0, 0, 1, 1], [], []>} : vector<64x32xbf16>, vector<32x128xbf16>, vector<64x128xf32> -> vector<64x128xf32>
    %207 = vector.broadcast %204 : vector<1x128xf32> to vector<64x128xf32>
    %208 = arith.addf %206, %207 : vector<64x128xf32>
    %c0_59 = arith.constant 0 : index
    %c0_60 = arith.constant 0 : index
    %209 = vector.load %arg11[%c0_59, %c0_60] : memref<64x128xf32, #tpu.memory_space<vmem>>, vector<64x128xf32>
    tpu.vector_store %arg11[%c0_59, %c0_60], %208 {strides = array<i32>} : memref<64x128xf32, #tpu.memory_space<vmem>>, vector<64x128xf32>,
    %cst_61 = arith.constant 0.000000e+00 : f32
    %210 = vector.broadcast %cst_61 : f32 to vector<8x32xf32>
    %c0_i32_62 = arith.constant 0 : i32
    %c8_i32_63 = arith.constant 8 : i32
    %211 = arith.muli %c0_i32_62, %c8_i32_63 : i32
    %212 = tpu.assume_multiple %211, 8 : i32
    %213 = arith.index_cast %212 : i32 to index
    %c0_64 = arith.constant 0 : index
    %214 = vector.load %arg11[%213, %c0_64] : memref<64x128xf32, #tpu.memory_space<vmem>>, vector<8x128xf32>
    %215 = arith.truncf %210 : vector<8x32xf32> to vector<8x32xbf16>
    %cst_65 = arith.constant dense<0.000000e+00> : vector<8x128xf32>
    %216 = tpu.matmul %215, %203, %cst_65 {dimension_numbers = #tpu.dot_dimension_numbers<[1], [0], [0], [1], [0, 0, 1, 1], [], []>} : vector<8x32xbf16>, vector<32x128xbf16>, vector<8x128xf32> -> vector<8x128xf32>
    %217 = arith.addf %214, %216 : vector<8x128xf32>
    %218 = arith.negf %217 : vector<8x128xf32>
    %219 = math.exp %218 : vector<8x128xf32>
    %cst_66 = arith.constant 1.000000e+00 : f32
    %220 = vector.broadcast %cst_66 : f32 to vector<8x128xf32>
    %221 = arith.addf %220, %219 : vector<8x128xf32>
    %222 = arith.divf %220, %221 : vector<8x128xf32>
    %223 = math.tanh %217 : vector<8x128xf32>
    %224 = vector.extract_strided_slice %222 {offsets = [0, 0], sizes = [8, 32], strides = [1, 1]} : vector<8x128xf32> to vector<8x32xf32>
    %225 = vector.extract_strided_slice %222 {offsets = [0, 32], sizes = [8, 32], strides = [1, 1]} : vector<8x128xf32> to vector<8x32xf32>
    %226 = vector.extract_strided_slice %223 {offsets = [0, 64], sizes = [8, 32], strides = [1, 1]} : vector<8x128xf32> to vector<8x32xf32>
    %227 = vector.extract_strided_slice %222 {offsets = [0, 96], sizes = [8, 32], strides = [1, 1]} : vector<8x128xf32> to vector<8x32xf32>
    %228 = arith.mulf %225, %210 : vector<8x32xf32>
    %229 = arith.mulf %224, %226 : vector<8x32xf32>
    %230 = arith.addf %228, %229 : vector<8x32xf32>
    %231 = math.tanh %230 : vector<8x32xf32>
    %232 = arith.mulf %227, %231 : vector<8x32xf32>
    %c1_i32_67 = arith.constant 1 : i32
    %c8_i32_68 = arith.constant 8 : i32
    %233 = arith.muli %c1_i32_67, %c8_i32_68 : i32
    %234 = tpu.assume_multiple %233, 8 : i32
    %235 = arith.index_cast %234 : i32 to index
    %c0_69 = arith.constant 0 : index
    %236 = vector.load %arg11[%235, %c0_69] : memref<64x128xf32, #tpu.memory_space<vmem>>, vector<8x128xf32>
    %237 = arith.truncf %232 : vector<8x32xf32> to vector<8x32xbf16>
    %cst_70 = arith.constant dense<0.000000e+00> : vector<8x128xf32>
    %238 = tpu.matmul %237, %203, %cst_70 {dimension_numbers = #tpu.dot_dimension_numbers<[1], [0], [0], [1], [0, 0, 1, 1], [], []>} : vector<8x32xbf16>, vector<32x128xbf16>, vector<8x128xf32> -> vector<8x128xf32>
    %239 = arith.addf %236, %238 : vector<8x128xf32>
    %240 = arith.negf %239 : vector<8x128xf32>
    %241 = math.exp %240 : vector<8x128xf32>
    %cst_71 = arith.constant 1.000000e+00 : f32
    %242 = vector.broadcast %cst_71 : f32 to vector<8x128xf32>
    %243 = arith.addf %242, %241 : vector<8x128xf32>
    %244 = arith.divf %242, %243 : vector<8x128xf32>
    %245 = math.tanh %239 : vector<8x128xf32>
    %246 = vector.extract_strided_slice %244 {offsets = [0, 0], sizes = [8, 32], strides = [1, 1]} : vector<8x128xf32> to vector<8x32xf32>
    %247 = vector.extract_strided_slice %244 {offsets = [0, 32], sizes = [8, 32], strides = [1, 1]} : vector<8x128xf32> to vector<8x32xf32>
    %248 = vector.extract_strided_slice %245 {offsets = [0, 64], sizes = [8, 32], strides = [1, 1]} : vector<8x128xf32> to vector<8x32xf32>
    %249 = vector.extract_strided_slice %244 {offsets = [0, 96], sizes = [8, 32], strides = [1, 1]} : vector<8x128xf32> to vector<8x32xf32>
    %250 = arith.mulf %247, %230 : vector<8x32xf32>
    %251 = arith.mulf %246, %248 : vector<8x32xf32>
    %252 = arith.addf %250, %251 : vector<8x32xf32>
    %253 = math.tanh %252 : vector<8x32xf32>
    %254 = arith.mulf %249, %253 : vector<8x32xf32>
    %c2_i32_72 = arith.constant 2 : i32
    %c8_i32_73 = arith.constant 8 : i32
    %255 = arith.muli %c2_i32_72, %c8_i32_73 : i32
    %256 = tpu.assume_multiple %255, 8 : i32
    %257 = arith.index_cast %256 : i32 to index
    %c0_74 = arith.constant 0 : index
    %258 = vector.load %arg11[%257, %c0_74] : memref<64x128xf32, #tpu.memory_space<vmem>>, vector<8x128xf32>
    %259 = arith.truncf %254 : vector<8x32xf32> to vector<8x32xbf16>
    %cst_75 = arith.constant dense<0.000000e+00> : vector<8x128xf32>
    %260 = tpu.matmul %259, %203, %cst_75 {dimension_numbers = #tpu.dot_dimension_numbers<[1], [0], [0], [1], [0, 0, 1, 1], [], []>} : vector<8x32xbf16>, vector<32x128xbf16>, vector<8x128xf32> -> vector<8x128xf32>
    %261 = arith.addf %258, %260 : vector<8x128xf32>
    %262 = arith.negf %261 : vector<8x128xf32>
    %263 = math.exp %262 : vector<8x128xf32>
    %cst_76 = arith.constant 1.000000e+00 : f32
    %264 = vector.broadcast %cst_76 : f32 to vector<8x128xf32>
    %265 = arith.addf %264, %263 : vector<8x128xf32>
    %266 = arith.divf %264, %265 : vector<8x128xf32>
    %267 = math.tanh %261 : vector<8x128xf32>
    %268 = vector.extract_strided_slice %266 {offsets = [0, 0], sizes = [8, 32], strides = [1, 1]} : vector<8x128xf32> to vector<8x32xf32>
    %269 = vector.extract_strided_slice %266 {offsets = [0, 32], sizes = [8, 32], strides = [1, 1]} : vector<8x128xf32> to vector<8x32xf32>
    %270 = vector.extract_strided_slice %267 {offsets = [0, 64], sizes = [8, 32], strides = [1, 1]} : vector<8x128xf32> to vector<8x32xf32>
    %271 = vector.extract_strided_slice %266 {offsets = [0, 96], sizes = [8, 32], strides = [1, 1]} : vector<8x128xf32> to vector<8x32xf32>
    %272 = arith.mulf %269, %252 : vector<8x32xf32>
    %273 = arith.mulf %268, %270 : vector<8x32xf32>
    %274 = arith.addf %272, %273 : vector<8x32xf32>
    %275 = math.tanh %274 : vector<8x32xf32>
    %276 = arith.mulf %271, %275 : vector<8x32xf32>
    %c3_i32_77 = arith.constant 3 : i32
    %c8_i32_78 = arith.constant 8 : i32
    %277 = arith.muli %c3_i32_77, %c8_i32_78 : i32
    %278 = tpu.assume_multiple %277, 8 : i32
    %279 = arith.index_cast %278 : i32 to index
    %c0_79 = arith.constant 0 : index
    %280 = vector.load %arg11[%279, %c0_79] : memref<64x128xf32, #tpu.memory_space<vmem>>, vector<8x128xf32>
    %281 = arith.truncf %276 : vector<8x32xf32> to vector<8x32xbf16>
    %cst_80 = arith.constant dense<0.000000e+00> : vector<8x128xf32>
    %282 = tpu.matmul %281, %203, %cst_80 {dimension_numbers = #tpu.dot_dimension_numbers<[1], [0], [0], [1], [0, 0, 1, 1], [], []>} : vector<8x32xbf16>, vector<32x128xbf16>, vector<8x128xf32> -> vector<8x128xf32>
    %283 = arith.addf %280, %282 : vector<8x128xf32>
    %284 = arith.negf %283 : vector<8x128xf32>
    %285 = math.exp %284 : vector<8x128xf32>
    %cst_81 = arith.constant 1.000000e+00 : f32
    %286 = vector.broadcast %cst_81 : f32 to vector<8x128xf32>
    %287 = arith.addf %286, %285 : vector<8x128xf32>
    %288 = arith.divf %286, %287 : vector<8x128xf32>
    %289 = math.tanh %283 : vector<8x128xf32>
    %290 = vector.extract_strided_slice %288 {offsets = [0, 0], sizes = [8, 32], strides = [1, 1]} : vector<8x128xf32> to vector<8x32xf32>
    %291 = vector.extract_strided_slice %288 {offsets = [0, 32], sizes = [8, 32], strides = [1, 1]} : vector<8x128xf32> to vector<8x32xf32>
    %292 = vector.extract_strided_slice %289 {offsets = [0, 64], sizes = [8, 32], strides = [1, 1]} : vector<8x128xf32> to vector<8x32xf32>
    %293 = vector.extract_strided_slice %288 {offsets = [0, 96], sizes = [8, 32], strides = [1, 1]} : vector<8x128xf32> to vector<8x32xf32>
    %294 = arith.mulf %291, %274 : vector<8x32xf32>
    %295 = arith.mulf %290, %292 : vector<8x32xf32>
    %296 = arith.addf %294, %295 : vector<8x32xf32>
    %297 = math.tanh %296 : vector<8x32xf32>
    %298 = arith.mulf %293, %297 : vector<8x32xf32>
    %c4_i32_82 = arith.constant 4 : i32
    %c8_i32_83 = arith.constant 8 : i32
    %299 = arith.muli %c4_i32_82, %c8_i32_83 : i32
    %300 = tpu.assume_multiple %299, 8 : i32
    %301 = arith.index_cast %300 : i32 to index
    %c0_84 = arith.constant 0 : index
    %302 = vector.load %arg11[%301, %c0_84] : memref<64x128xf32, #tpu.memory_space<vmem>>, vector<8x128xf32>
    %303 = arith.truncf %298 : vector<8x32xf32> to vector<8x32xbf16>
    %cst_85 = arith.constant dense<0.000000e+00> : vector<8x128xf32>
    %304 = tpu.matmul %303, %203, %cst_85 {dimension_numbers = #tpu.dot_dimension_numbers<[1], [0], [0], [1], [0, 0, 1, 1], [], []>} : vector<8x32xbf16>, vector<32x128xbf16>, vector<8x128xf32> -> vector<8x128xf32>
    %305 = arith.addf %302, %304 : vector<8x128xf32>
    %306 = arith.negf %305 : vector<8x128xf32>
    %307 = math.exp %306 : vector<8x128xf32>
    %cst_86 = arith.constant 1.000000e+00 : f32
    %308 = vector.broadcast %cst_86 : f32 to vector<8x128xf32>
    %309 = arith.addf %308, %307 : vector<8x128xf32>
    %310 = arith.divf %308, %309 : vector<8x128xf32>
    %311 = math.tanh %305 : vector<8x128xf32>
    %312 = vector.extract_strided_slice %310 {offsets = [0, 0], sizes = [8, 32], strides = [1, 1]} : vector<8x128xf32> to vector<8x32xf32>
    %313 = vector.extract_strided_slice %310 {offsets = [0, 32], sizes = [8, 32], strides = [1, 1]} : vector<8x128xf32> to vector<8x32xf32>
    %314 = vector.extract_strided_slice %311 {offsets = [0, 64], sizes = [8, 32], strides = [1, 1]} : vector<8x128xf32> to vector<8x32xf32>
    %315 = vector.extract_strided_slice %310 {offsets = [0, 96], sizes = [8, 32], strides = [1, 1]} : vector<8x128xf32> to vector<8x32xf32>
    %316 = arith.mulf %313, %296 : vector<8x32xf32>
    %317 = arith.mulf %312, %314 : vector<8x32xf32>
    %318 = arith.addf %316, %317 : vector<8x32xf32>
    %319 = math.tanh %318 : vector<8x32xf32>
    %320 = arith.mulf %315, %319 : vector<8x32xf32>
    %c5_i32_87 = arith.constant 5 : i32
    %c8_i32_88 = arith.constant 8 : i32
    %321 = arith.muli %c5_i32_87, %c8_i32_88 : i32
    %322 = tpu.assume_multiple %321, 8 : i32
    %323 = arith.index_cast %322 : i32 to index
    %c0_89 = arith.constant 0 : index
    %324 = vector.load %arg11[%323, %c0_89] : memref<64x128xf32, #tpu.memory_space<vmem>>, vector<8x128xf32>
    %325 = arith.truncf %320 : vector<8x32xf32> to vector<8x32xbf16>
    %cst_90 = arith.constant dense<0.000000e+00> : vector<8x128xf32>
    %326 = tpu.matmul %325, %203, %cst_90 {dimension_numbers = #tpu.dot_dimension_numbers<[1], [0], [0], [1], [0, 0, 1, 1], [], []>} : vector<8x32xbf16>, vector<32x128xbf16>, vector<8x128xf32> -> vector<8x128xf32>
    %327 = arith.addf %324, %326 : vector<8x128xf32>
    %328 = arith.negf %327 : vector<8x128xf32>
    %329 = math.exp %328 : vector<8x128xf32>
    %cst_91 = arith.constant 1.000000e+00 : f32
    %330 = vector.broadcast %cst_91 : f32 to vector<8x128xf32>
    %331 = arith.addf %330, %329 : vector<8x128xf32>
    %332 = arith.divf %330, %331 : vector<8x128xf32>
    %333 = math.tanh %327 : vector<8x128xf32>
    %334 = vector.extract_strided_slice %332 {offsets = [0, 0], sizes = [8, 32], strides = [1, 1]} : vector<8x128xf32> to vector<8x32xf32>
    %335 = vector.extract_strided_slice %332 {offsets = [0, 32], sizes = [8, 32], strides = [1, 1]} : vector<8x128xf32> to vector<8x32xf32>
    %336 = vector.extract_strided_slice %333 {offsets = [0, 64], sizes = [8, 32], strides = [1, 1]} : vector<8x128xf32> to vector<8x32xf32>
    %337 = vector.extract_strided_slice %332 {offsets = [0, 96], sizes = [8, 32], strides = [1, 1]} : vector<8x128xf32> to vector<8x32xf32>
    %338 = arith.mulf %335, %318 : vector<8x32xf32>
    %339 = arith.mulf %334, %336 : vector<8x32xf32>
    %340 = arith.addf %338, %339 : vector<8x32xf32>
    %341 = math.tanh %340 : vector<8x32xf32>
    %342 = arith.mulf %337, %341 : vector<8x32xf32>
    %c6_i32_92 = arith.constant 6 : i32
    %c8_i32_93 = arith.constant 8 : i32
    %343 = arith.muli %c6_i32_92, %c8_i32_93 : i32
    %344 = tpu.assume_multiple %343, 8 : i32
    %345 = arith.index_cast %344 : i32 to index
    %c0_94 = arith.constant 0 : index
    %346 = vector.load %arg11[%345, %c0_94] : memref<64x128xf32, #tpu.memory_space<vmem>>, vector<8x128xf32>
    %347 = arith.truncf %342 : vector<8x32xf32> to vector<8x32xbf16>
    %cst_95 = arith.constant dense<0.000000e+00> : vector<8x128xf32>
    %348 = tpu.matmul %347, %203, %cst_95 {dimension_numbers = #tpu.dot_dimension_numbers<[1], [0], [0], [1], [0, 0, 1, 1], [], []>} : vector<8x32xbf16>, vector<32x128xbf16>, vector<8x128xf32> -> vector<8x128xf32>
    %349 = arith.addf %346, %348 : vector<8x128xf32>
    %350 = arith.negf %349 : vector<8x128xf32>
    %351 = math.exp %350 : vector<8x128xf32>
    %cst_96 = arith.constant 1.000000e+00 : f32
    %352 = vector.broadcast %cst_96 : f32 to vector<8x128xf32>
    %353 = arith.addf %352, %351 : vector<8x128xf32>
    %354 = arith.divf %352, %353 : vector<8x128xf32>
    %355 = math.tanh %349 : vector<8x128xf32>
    %356 = vector.extract_strided_slice %354 {offsets = [0, 0], sizes = [8, 32], strides = [1, 1]} : vector<8x128xf32> to vector<8x32xf32>
    %357 = vector.extract_strided_slice %354 {offsets = [0, 32], sizes = [8, 32], strides = [1, 1]} : vector<8x128xf32> to vector<8x32xf32>
    %358 = vector.extract_strided_slice %355 {offsets = [0, 64], sizes = [8, 32], strides = [1, 1]} : vector<8x128xf32> to vector<8x32xf32>
    %359 = vector.extract_strided_slice %354 {offsets = [0, 96], sizes = [8, 32], strides = [1, 1]} : vector<8x128xf32> to vector<8x32xf32>
    %360 = arith.mulf %357, %340 : vector<8x32xf32>
    %361 = arith.mulf %356, %358 : vector<8x32xf32>
    %362 = arith.addf %360, %361 : vector<8x32xf32>
    %363 = math.tanh %362 : vector<8x32xf32>
    %364 = arith.mulf %359, %363 : vector<8x32xf32>
    %c7_i32_97 = arith.constant 7 : i32
    %c8_i32_98 = arith.constant 8 : i32
    %365 = arith.muli %c7_i32_97, %c8_i32_98 : i32
    %366 = tpu.assume_multiple %365, 8 : i32
    %367 = arith.index_cast %366 : i32 to index
    %c0_99 = arith.constant 0 : index
    %368 = vector.load %arg11[%367, %c0_99] : memref<64x128xf32, #tpu.memory_space<vmem>>, vector<8x128xf32>
    %369 = arith.truncf %364 : vector<8x32xf32> to vector<8x32xbf16>
    %cst_100 = arith.constant dense<0.000000e+00> : vector<8x128xf32>
    %370 = tpu.matmul %369, %203, %cst_100 {dimension_numbers = #tpu.dot_dimension_numbers<[1], [0], [0], [1], [0, 0, 1, 1], [], []>} : vector<8x32xbf16>, vector<32x128xbf16>, vector<8x128xf32> -> vector<8x128xf32>
    %371 = arith.addf %368, %370 : vector<8x128xf32>
    %372 = arith.negf %371 : vector<8x128xf32>
    %373 = math.exp %372 : vector<8x128xf32>
    %cst_101 = arith.constant 1.000000e+00 : f32
    %374 = vector.broadcast %cst_101 : f32 to vector<8x128xf32>
    %375 = arith.addf %374, %373 : vector<8x128xf32>
    %376 = arith.divf %374, %375 : vector<8x128xf32>
    %377 = math.tanh %371 : vector<8x128xf32>
    %378 = vector.extract_strided_slice %376 {offsets = [0, 0], sizes = [8, 32], strides = [1, 1]} : vector<8x128xf32> to vector<8x32xf32>
    %379 = vector.extract_strided_slice %376 {offsets = [0, 32], sizes = [8, 32], strides = [1, 1]} : vector<8x128xf32> to vector<8x32xf32>
    %380 = vector.extract_strided_slice %377 {offsets = [0, 64], sizes = [8, 32], strides = [1, 1]} : vector<8x128xf32> to vector<8x32xf32>
    %381 = vector.extract_strided_slice %376 {offsets = [0, 96], sizes = [8, 32], strides = [1, 1]} : vector<8x128xf32> to vector<8x32xf32>
    %382 = arith.mulf %379, %362 : vector<8x32xf32>
    %383 = arith.mulf %378, %380 : vector<8x32xf32>
    %384 = arith.addf %382, %383 : vector<8x32xf32>
    %385 = math.tanh %384 : vector<8x32xf32>
    %386 = arith.mulf %381, %385 : vector<8x32xf32>
    %c8_i32_102 = arith.constant 8 : i32
    %387 = arith.truncf %386 : vector<8x32xf32> to vector<8x32xbf16>
    %c0_103 = arith.constant 0 : index
    %c0_104 = arith.constant 0 : index
    %388 = vector.load %arg8[%c0_103, %c0_104] : memref<32x128xbf16, #tpu.memory_space<vmem>>, vector<32x128xbf16>
    %cst_105 = arith.constant dense<0.000000e+00> : vector<8x128xf32>
    %389 = tpu.matmul %387, %388, %cst_105 {dimension_numbers = #tpu.dot_dimension_numbers<[1], [0], [0], [1], [0, 0, 1, 1], [], []>} : vector<8x32xbf16>, vector<32x128xbf16>, vector<8x128xf32> -> vector<8x128xf32>
    %c0_106 = arith.constant 0 : index
    %c0_107 = arith.constant 0 : index
    %390 = vector.load %arg9[%c0_106, %c0_107] : memref<1x128xf32, #tpu.memory_space<vmem>>, vector<1x128xf32>
    %391 = vector.broadcast %390 : vector<1x128xf32> to vector<8x128xf32>
    %392 = arith.addf %389, %391 : vector<8x128xf32>
    %c0_108 = arith.constant 0 : index
    %c0_109 = arith.constant 0 : index
    %393 = vector.load %arg10[%c0_108, %c0_109] : memref<8x128xf32, #tpu.memory_space<vmem>>, vector<8x128xf32>
    tpu.vector_store %arg10[%c0_108, %c0_109], %392 {strides = array<i32>} : memref<8x128xf32, #tpu.memory_space<vmem>>, vector<8x128xf32>,
    return
  }
  func.func @transform_0(%arg0: i32) -> (i32, i32) {
    %c0_i32 = arith.constant 0 : i32
    %c0_i32_0 = arith.constant 0 : i32
    %c0_i32_1 = arith.constant 0 : i32
    return %c0_i32, %c0_i32_0 : i32, i32
  }
  func.func @transform_1(%arg0: i32) -> (i32, i32) {
    %c0_i32 = arith.constant 0 : i32
    %c0_i32_0 = arith.constant 0 : i32
    %c0_i32_1 = arith.constant 0 : i32
    return %c0_i32, %c0_i32_0 : i32, i32
  }
  func.func @transform_2(%arg0: i32) -> (i32, i32) {
    %c0_i32 = arith.constant 0 : i32
    %c0_i32_0 = arith.constant 0 : i32
    %c0_i32_1 = arith.constant 0 : i32
    return %c0_i32, %c0_i32_0 : i32, i32
  }
  func.func @transform_3(%arg0: i32) -> (i32, i32) {
    %c0_i32 = arith.constant 0 : i32
    %c0_i32_0 = arith.constant 0 : i32
    %c0_i32_1 = arith.constant 0 : i32
    return %c0_i32, %c0_i32_0 : i32, i32
  }
  func.func @transform_4(%arg0: i32) -> (i32, i32) {
    %c0_i32 = arith.constant 0 : i32
    %c0_i32_0 = arith.constant 0 : i32
    %c0_i32_1 = arith.constant 0 : i32
    return %c0_i32, %c0_i32_0 : i32, i32
  }
  func.func @transform_5(%arg0: i32) -> (i32, i32) {
    %c0_i32 = arith.constant 0 : i32
    %c0_i32_0 = arith.constant 0 : i32
    %c0_i32_1 = arith.constant 0 : i32
    return %c0_i32, %c0_i32_0 : i32, i32
  }
  func.func @transform_6(%arg0: i32) -> (i32, i32) {
    %c0_i32 = arith.constant 0 : i32
    %c0_i32_0 = arith.constant 0 : i32
    %c0_i32_1 = arith.constant 0 : i32
    return %c0_i32, %c0_i32_0 : i32, i32
  }
  func.func @transform_7(%arg0: i32) -> (i32, i32) {
    %c0_i32 = arith.constant 0 : i32
    %c0_i32_0 = arith.constant 0 : i32
    %c0_i32_1 = arith.constant 0 : i32
    return %c0_i32, %c0_i32_0 : i32, i32
  }
  func.func @transform_8(%arg0: i32) -> (i32, i32) {
    %c0_i32 = arith.constant 0 : i32
    %c0_i32_0 = arith.constant 0 : i32
    %c0_i32_1 = arith.constant 0 : i32
    return %c0_i32, %c0_i32_0 : i32, i32
  }
  func.func @transform_9(%arg0: i32) -> (i32, i32) {
    %c0_i32 = arith.constant 0 : i32
    %c0_i32_0 = arith.constant 0 : i32
    %c0_i32_1 = arith.constant 0 : i32
    return %c0_i32, %c0_i32_0 : i32, i32
  }
}

</mosaic_0001>

<bundles_post_ra>
// kernel: tpu_custom_call.1
= control target key start
LH: loop header
LB: loop body
LE: loop exit
PB: predicated region body
PF: predicated region fallthrough
CT: control target
= control target key end

     0   :  { %14 = vsyncpa [#allocation5], 0  ;;  %s2550_s0 = inlined_call_operand.vmem [shape: bf16[64,32], index: 0, kind: input, shape index: {}]   ;;  %s2551_s1 = inlined_call_operand.vmem [shape: bf16[32,128], index: 1, kind: input, shape index: {}]   ;;  %s2552_s2 = inlined_call_operand.vmem [shape: bf16[32,128], index: 2, kind: input, shape index: {}]   ;;  %s2553_s3 = inlined_call_operand.vmem [shape: f32[1,128], index: 3, kind: input, shape index: {}]   ;;  %s2554_s4 = inlined_call_operand.vmem [shape: bf16[32,128], index: 4, kind: input, shape index: {}]   ;;  %s2555_s5 = inlined_call_operand.vmem [shape: bf16[32,128], index: 5, kind: input, shape index: {}]   ;;  %s2556_s6 = inlined_call_operand.vmem [shape: f32[1,128], index: 6, kind: input, shape index: {}]   ;;  %s2557_s7 = inlined_call_operand.hbm [shape: bf16[32,128], index: 7, kind: input, shape index: {}]   ;;  %s2558_s8 = inlined_call_operand.vmem [shape: f32[1,128], index: 8, kind: input, shape index: {}]   ;;  %s2559_s9 = inlined_call_operand.hbm [shape: f32[8,128], index: 9, kind: output, shape index: {}]  }
   0x1   :  { %15 = vsyncpa [#allocation6], 0  ;;  %s2111_s30 = smov [#allocation4]   ;;  %s2063_s13 = scalar_lea.hbm %s2557_s7, 256 }
   0x2   :  { %s35_s10 = sshll.u32 %s2111_s30, 4  ;;  %p2064_p0 = scmp.ne.s32.totalorder %s2557_s7, %s2063_s13  ;;  %s36_s10 = int_to_ptr.vmem [resolvable:$true] %s35_s10 }
   0x3   :  { %p2067_p1 = scmp.lt.u32.totalorder %s2063_s13, %s2557_s7 }
   0x5   :  { %p2069_p2 = pnand %p2067_p1, %p2064_p0 }
   0x7   :  { %2072 = shalt.err (!%p2069_p2)
}
   0x8   :  { %s2073_s18 = scalar_lea.vmem %s36_s10, 256  ;;  %p2078_p4 = scmp.lt.s32.totalorder %s36_s10, %s36_s10 }
   0x9   :  { %p2074_p3 = scmp.ne.s32.totalorder %s36_s10, %s2073_s18  ;;  %p2079_p5 = scmp.lt.s32.totalorder %s2073_s18, %s2073_s18 }
   0xb   :  { %p2080_p6 = por %p2079_p5, %p2078_p4 }
   0xd   :  { %p2081_p7 = pnand %p2080_p6, %p2074_p3 }
   0xf   :  { %2084 = shalt.err (!%p2081_p7)
}
  0x10   :  { %s2112_s19 = smov 64   ;;  %s2113_s20 = smov 4  }
  0x11   :  { %41 = dma.hbm_to_vmem [thread:$0]  %s2557_s7, 256, %s36_s10, [#allocation5], %s2112_s19, %s2112_s19, %s2113_s20  }
  0x12   :  { %2107 = dma.done.wait [#allocation5], 256  }
  0x13   :  { %2108 = vsyncadd [#allocation5], 4294967040  ;;  %v2114_v0 = vmov 0.0   ;;  %vm2115_vm0 = vmmov 0   ;;  %v1921_v1 = vld [vmem:[%s2551_s1] sm:$0xff]   ;;  %v1923_v3 = vld [vmem:[%s2551_s1 + $0x8] sm:$0xff]  }
  0x14   :  { %1765 = vmatprep.subr.bf16.mxu1 %v2114_v0  ;;  %1769 = vmatprep.mubr.msk.bf16.mxu1 %vm2115_vm0, %v2114_v0  ;;  %v2192_v2 = vld [vmem:[%s2552_s2] sm:$0xff]   ;;  %v2201_v4 = vld [vmem:[%s2552_s2 + $0x8] sm:$0xff]   ;;  %vm103_vm1 = vcmask 261120   ;;  %v2116_v7 = vmov 0   ;;  %v1927_v50 = vld [vmem:[%s2550_s0 + $0x10] sm:$0xff]   ;;  %s2118_s26 = smov [#allocation7]  }
  0x15   :  { %1753 = vmatprep.subr.bf16.mxu0 %v1921_v1  ;;  %1766 = vmatpush3.bf16.msra.mxu1 %v2192_v2  ;;  %v1925_v5 = vld [vmem:[%s2550_s0] sm:$0xff]   ;;  %v1926_v6 = vld [vmem:[%s2550_s0 + $0x8] sm:$0xff]   ;;  %v1928_v51 = vld [vmem:[%s2550_s0 + $0x18] sm:$0xff]   ;;  %s1625_s7 = sshll.u32 %s2118_s26, 4  ;;  %s1626_s7 = int_to_ptr.vmem [resolvable:$true] %s1625_s7 }
  0x16   :  { %1754 = vmatpush3.bf16.msra.mxu0 %v1921_v1  ;;  %1767 = vmatprep.subr.bf16.mxu1 %v2114_v0  ;;  %v2229_v8 = vld [vmem:[%s2553_s3] ss:$0 sm:$0xff]  ;;  %s2117_s3 = smov 32   ;;  %p2090_p9 = scmp.lt.s32.totalorder %s1626_s7, %s1626_s7 }
  0x17   :  { %1755 = vmatprep.subr.bf16.mxu0 %v1923_v3  ;;  %1757 = vmatprep.mubr.msk.bf16.mxu0 %vm103_vm1, %v1925_v5 }
  0x19   :  { %1768 = vmatpush3.bf16.msra.mxu1 %v2201_v4 }
  0x1a   :  { %1756 = vmatpush3.bf16.msra.mxu0 %v1923_v3  ;;  %1773 = vmatprep.subr.bf16.mxu1 %v2114_v0 }
  0x1b   :  { %1781 = vmatprep.subr.bf16.mxu0 %v2114_v0 }
  0x1c   :  { %1770 = vmatmul.mubr.bf16.vlgmr.msra.gmra.mrb[0].mxu1 %v2116_v7 }
  0x1d   :  { %1758 = vmatmul.mubr.msk.bf16.vlgmr.msra.gmra.mrb[0].mxu0 %vm103_vm1, %v1926_v6  ;;  %1774 = vmatpush3.bf16.msra.mxu1 %v2192_v2 }
  0x1e   :  { %1777 = vmatprep.mubr.msk.bf16.mxu1 %vm2115_vm0, %v2114_v0  ;;  %1775 = vmatprep.subr.bf16.mxu1 %v2114_v0 }
  0x1f   :  { %1782 = vmatpush3.bf16.msra.mxu0 %v2192_v2  ;;  %1761 = vmatprep.mubr.msk.bf16.mxu0 %vm103_vm1, %v1927_v50 }
  0x20   :  { %1783 = vmatprep.subr.bf16.mxu0 %v2114_v0 }
  0x21   :  { %1776 = vmatpush3.bf16.msra.mxu1 %v2201_v4 }
  0x22   :  { %1789 = vmatprep.subr.bf16.mxu1 %v2114_v0 }
  0x23   :  { %1784 = vmatpush3.bf16.msra.mxu0 %v2201_v4 }
  0x24   :  { %1797 = vmatprep.subr.bf16.mxu0 %v2114_v0 }
  0x25   :  { %1762 = vmatmul.mubr.msk.bf16.gmra.mrb[4].mxu0 %vm103_vm1, %v1928_v51 }
  0x26   :  { %1785 = vmatprep.mubr.msk.bf16.mxu0 %vm2115_vm0, %v2114_v0 }
  0xef   :  { %v239_v10 = vpop.f32.mrb[0].mxu1 }
  0xf0   :  { %v2231_v9 = vpop.f32.mrb[0].mxu0  ;;  %v1771_v12 = vpop.f32.mrb[1].mxu1 }
  0xf1   :  { %v150_v11 = vpop.f32.mrb[1].mxu0  ;;  %v242_v15 = vpop.f32.mrb[2].mxu1  ;;  %v159_v61 = vadd.f32 %v2231_v9, %v2229_v8 }
  0xf2   :  { %v151_v13 = vadd.f32 %v2229_v8, %v150_v11  ;;  %v2234_v14 = vpop.f32.mrb[2].mxu0  ;;  %v1772_v17 = vpop.f32.mrb[3].mxu1 }
  0xf3   :  { %v153_v16 = vpop.f32.mrb[3].mxu0 }
  0xf4   :  { %v245_v18 = vadd.f32 %v239_v10, %v151_v13  ;;  %v154_v34 = vadd.f32 %v2229_v8, %v153_v16 }
  0xf6   :  { %1935 = vtanh.f32 %v245_v18  ;;  %v1647_v20 = vmul.f32 -1.442695, %v245_v18 }
  0xf8   :  { %1937 = vpow2.f32 %v1647_v20  ;;  %v2270_v56 = vpop.f32.mrb[4].mxu0 }
  0xf9   :  { %v2272_v57 = vpop.f32.mrb[5].mxu0 }
  0xfa   :  { %v2274_v58 = vpop.f32.mrb[6].mxu0 }
  0xfb   :  { %v2276_v59 = vpop.f32.mrb[7].mxu0 }
 0x100   :  { %v1936_v19 = vpop.eup %1935 }
 0x101   :  { %255 = vrot.lane.b32.xlu0 %v1936_v19, %s2112_s19 }
 0x102   :  { %v1938_v21 = vpop.eup %1937 }
 0x103   :  { %v249_v22 = vadd.f32 1.0, %v1938_v21 }
 0x105   :  { %1939 = vrcp.f32 %v249_v22 }
 0x10f   :  { %v1940_v23 = vpop.eup %1939 }
 0x110   :  { %v253_v26 = vmul.f32 0.0, %v1940_v23 }
 0x173   :  { %v256_v24 = vpop.permute.xlu0 %255 }
 0x174   :  { %v258_v25 = vmul.f32 %v1940_v23, %v256_v24  ;;  %v162_v24 = vadd.f32 %v2234_v14, %v2229_v8 }
 0x176   :  { %260 = vrot.lane.b32.xlu0 %v258_v25, %s2117_s3 }
 0x1e8   :  { %v261_v27 = vpop.permute.xlu0 %260 }
 0x1e9   :  { %v263_v28 = vadd.f32 %v261_v27, %v253_v26 }
 0x1eb   :  { %1941 = vtanh.f32 %v263_v28 }
 0x1f5   :  { %v1942_v29 = vpop.eup %1941 }
 0x1f6   :  { %266 = vrot.lane.b32.xlu1 %v1942_v29, %s2112_s19 }
 0x268   :  { %v267_v30 = vpop.permute.xlu1 %266 }
 0x269   :  { %v2239_v31 = vmul.f32 %v1940_v23, %v267_v30 }
 0x26b   :  { %v277_v32 = vpack.c.bf16 %v2239_v31, %v2239_v31 }
 0x26d   :  { %279 = vrot.lane.b32.xlu1 %v277_v32, %s2117_s3 }
 0x2df   :  { %v280_v33 = vpop.permute.xlu1 %279 }
 0x2e0   :  { %1778 = vmatmul.mubr.msk.bf16.vlgmr.msra.gmra.mrb[4].mxu1 %vm103_vm1, %v280_v33 }
 0x2e1   :  { %1790 = vmatpush3.bf16.msra.mxu1 %v2192_v2  ;;  %1793 = vmatprep.mubr.msk.bf16.mxu1 %vm2115_vm0, %v2114_v0 }
 0x2e2   :  { %1791 = vmatprep.subr.bf16.mxu1 %v2114_v0 }
 0x2e5   :  { %1792 = vmatpush3.bf16.msra.mxu1 %v2201_v4 }
 0x2e6   :  { %1805 = vmatprep.subr.bf16.mxu1 %v2114_v0 }
 0x3b3   :  { %v318_v35 = vpop.f32.mrb[4].mxu1 }
 0x3b4   :  { %v324_v36 = vadd.f32 %v318_v35, %v154_v34  ;;  %v1779_v37 = vpop.f32.mrb[5].mxu1 }
 0x3b5   :  { %v321_v38 = vpop.f32.mrb[6].mxu1 }
 0x3b6   :  { %1943 = vtanh.f32 %v324_v36  ;;  %v1780_v39 = vpop.f32.mrb[7].mxu1  ;;  %v1649_v41 = vmul.f32 -1.442695, %v324_v36 }
 0x3b8   :  { %1945 = vpow2.f32 %v1649_v41 }
 0x3c0   :  { %v1944_v40 = vpop.eup %1943 }
 0x3c1   :  { %334 = vrot.lane.b32.xlu0 %v1944_v40, %s2112_s19 }
 0x3c2   :  { %v1946_v42 = vpop.eup %1945 }
 0x3c3   :  { %v328_v43 = vadd.f32 1.0, %v1946_v42 }
 0x3c5   :  { %1947 = vrcp.f32 %v328_v43 }
 0x3cf   :  { %v1948_v44 = vpop.eup %1947 }
 0x3d0   :  { %v332_v47 = vmul.f32 %v1948_v44, %v263_v28 }
 0x433   :  { %v335_v45 = vpop.permute.xlu0 %334 }
 0x434   :  { %v337_v46 = vmul.f32 %v1948_v44, %v335_v45  ;;  %v167_v45 = vadd.f32 %v2229_v8, %v2272_v57 }
 0x436   :  { %339 = vrot.lane.b32.xlu1 %v337_v46, %s2117_s3 }
 0x4a8   :  { %v340_v48 = vpop.permute.xlu1 %339 }
 0x4a9   :  { %v342_v49 = vadd.f32 %v340_v48, %v332_v47 }
 0x4ab   :  { %1949 = vtanh.f32 %v342_v49 }
 0x4b5   :  { %v1950_v52 = vpop.eup %1949 }
 0x4b6   :  { %345 = vrot.lane.b32.xlu0 %v1950_v52, %s2112_s19 }
 0x528   :  { %v346_v53 = vpop.permute.xlu0 %345 }
 0x529   :  { %v2265_v54 = vmul.f32 %v1948_v44, %v346_v53 }
 0x52b   :  { %v357_v55 = vpack.c.bf16 %v2265_v54, %v2265_v54 }
 0x52d   :  { %359 = vrot.lane.b32.xlu1 %v357_v55, %s2117_s3 }
 0x59f   :  { %v360_v60 = vpop.permute.xlu1 %359 }
 0x5a0   :  { %1786 = vmatmul.mubr.msk.bf16.vlgmr.msra.gmra.mrb[8].mxu0 %vm103_vm1, %v360_v60 }
 0x5a1   :  { %1798 = vmatpush3.bf16.msra.mxu0 %v2192_v2  ;;  %1801 = vmatprep.mubr.msk.bf16.mxu0 %vm2115_vm0, %v2114_v0 }
 0x5a2   :  { %1799 = vmatprep.subr.bf16.mxu0 %v2114_v0 }
 0x5a5   :  { %1800 = vmatpush3.bf16.msra.mxu0 %v2201_v4 }
 0x5a6   :  { %1813 = vmatprep.subr.bf16.mxu0 %v2114_v0 }
 0x673   :  { %v398_v62 = vpop.f32.mrb[8].mxu0 }
 0x674   :  { %v404_v63 = vadd.f32 %v398_v62, %v159_v61  ;;  %v1787_v1 = vpop.f32.mrb[9].mxu0 }
 0x675   :  { %v401_v3 = vpop.f32.mrb[10].mxu0 }
 0x676   :  { %1951 = vtanh.f32 %v404_v63  ;;  %v1788_v5 = vpop.f32.mrb[11].mxu0  ;;  %v1651_v10 = vmul.f32 -1.442695, %v404_v63 }
 0x678   :  { %1953 = vpow2.f32 %v1651_v10 }
 0x680   :  { %v1952_v6 = vpop.eup %1951 }
 0x681   :  { %414 = vrot.lane.b32.xlu0 %v1952_v6, %s2112_s19 }
 0x682   :  { %v1954_v11 = vpop.eup %1953 }
 0x683   :  { %v408_v12 = vadd.f32 1.0, %v1954_v11 }
 0x685   :  { %1955 = vrcp.f32 %v408_v12  ;;  %v170_v12 = vadd.f32 %v2229_v8, %v2276_v59 }
 0x68f   :  { %v1956_v13 = vpop.eup %1955 }
 0x690   :  { %v412_v9 = vmul.f32 %v1956_v13, %v342_v49 }
 0x6f3   :  { %v415_v15 = vpop.permute.xlu0 %414 }
 0x6f4   :  { %v417_v16 = vmul.f32 %v1956_v13, %v415_v15 }
 0x6f6   :  { %419 = vrot.lane.b32.xlu1 %v417_v16, %s2117_s3 }
 0x768   :  { %v420_v17 = vpop.permute.xlu1 %419 }
 0x769   :  { %v422_v18 = vadd.f32 %v420_v17, %v412_v9 }
 0x76b   :  { %1957 = vtanh.f32 %v422_v18 }
 0x775   :  { %v1958_v19 = vpop.eup %1957 }
 0x776   :  { %425 = vrot.lane.b32.xlu0 %v1958_v19, %s2112_s19 }
 0x7e8   :  { %v426_v20 = vpop.permute.xlu0 %425 }
 0x7e9   :  { %v2290_v21 = vmul.f32 %v1956_v13, %v426_v20 }
 0x7eb   :  { %v437_v22 = vpack.c.bf16 %v2290_v21, %v2290_v21 }
 0x7ed   :  { %439 = vrot.lane.b32.xlu1 %v437_v22, %s2117_s3 }
 0x85f   :  { %v440_v23 = vpop.permute.xlu1 %439 }
 0x860   :  { %1794 = vmatmul.mubr.msk.bf16.vlgmr.msra.gmra.mrb[8].mxu1 %vm103_vm1, %v440_v23 }
 0x861   :  { %1806 = vmatpush3.bf16.msra.mxu1 %v2192_v2  ;;  %1809 = vmatprep.mubr.msk.bf16.mxu1 %vm2115_vm0, %v2114_v0 }
 0x862   :  { %1807 = vmatprep.subr.bf16.mxu1 %v2114_v0 }
 0x865   :  { %1808 = vmatpush3.bf16.msra.mxu1 %v2201_v4 }
 0x866   :  { %1821 = vmatprep.subr.bf16.mxu1 %v2114_v0 }
 0x933   :  { %v478_v25 = vpop.f32.mrb[8].mxu1 }
 0x934   :  { %v484_v26 = vadd.f32 %v478_v25, %v162_v24  ;;  %v1795_v27 = vpop.f32.mrb[9].mxu1 }
 0x935   :  { %v481_v28 = vpop.f32.mrb[10].mxu1 }
 0x936   :  { %1959 = vtanh.f32 %v484_v26  ;;  %v1796_v29 = vpop.f32.mrb[11].mxu1  ;;  %v1653_v32 = vmul.f32 -1.442695, %v484_v26 }
 0x938   :  { %1961 = vpow2.f32 %v1653_v32  ;;  %v175_v32 = vadd.f32 %v2270_v56, %v2229_v8 }
 0x940   :  { %v1960_v30 = vpop.eup %1959 }
 0x941   :  { %494 = vrot.lane.b32.xlu0 %v1960_v30, %s2112_s19 }
 0x942   :  { %v1962_v33 = vpop.eup %1961 }
 0x943   :  { %v488_v34 = vadd.f32 1.0, %v1962_v33 }
 0x945   :  { %1963 = vrcp.f32 %v488_v34 }
 0x94f   :  { %v1964_v35 = vpop.eup %1963 }
 0x950   :  { %v492_v14 = vmul.f32 %v1964_v35, %v422_v18 }
 0x9b3   :  { %v495_v36 = vpop.permute.xlu0 %494 }
 0x9b4   :  { %v497_v37 = vmul.f32 %v1964_v35, %v495_v36 }
 0x9b6   :  { %499 = vrot.lane.b32.xlu1 %v497_v37, %s2117_s3 }
 0xa28   :  { %v500_v38 = vpop.permute.xlu1 %499 }
 0xa29   :  { %v502_v39 = vadd.f32 %v500_v38, %v492_v14 }
 0xa2b   :  { %1965 = vtanh.f32 %v502_v39 }
 0xa35   :  { %v1966_v40 = vpop.eup %1965 }
 0xa36   :  { %505 = vrot.lane.b32.xlu0 %v1966_v40, %s2112_s19 }
 0xaa8   :  { %v506_v41 = vpop.permute.xlu0 %505 }
 0xaa9   :  { %v2307_v42 = vmul.f32 %v1964_v35, %v506_v41 }
 0xaab   :  { %v517_v43 = vpack.c.bf16 %v2307_v42, %v2307_v42 }
 0xaad   :  { %519 = vrot.lane.b32.xlu1 %v517_v43, %s2117_s3 }
 0xb1f   :  { %v520_v44 = vpop.permute.xlu1 %519 }
 0xb20   :  { %1802 = vmatmul.mubr.msk.bf16.vlgmr.msra.gmra.mrb[12].mxu0 %vm103_vm1, %v520_v44 }
 0xb21   :  { %1814 = vmatpush3.bf16.msra.mxu0 %v2192_v2  ;;  %1817 = vmatprep.mubr.msk.bf16.mxu0 %vm2115_vm0, %v2114_v0 }
 0xb22   :  { %1815 = vmatprep.subr.bf16.mxu0 %v2114_v0 }
 0xb25   :  { %1816 = vmatpush3.bf16.msra.mxu0 %v2201_v4 }
 0xbf3   :  { %v558_v46 = vpop.f32.mrb[12].mxu0 }
 0xbf4   :  { %v564_v47 = vadd.f32 %v558_v46, %v167_v45  ;;  %v1803_v48 = vpop.f32.mrb[13].mxu0 }
 0xbf5   :  { %v561_v49 = vpop.f32.mrb[14].mxu0 }
 0xbf6   :  { %1967 = vtanh.f32 %v564_v47  ;;  %v1804_v50 = vpop.f32.mrb[15].mxu0  ;;  %v1655_v52 = vmul.f32 -1.442695, %v564_v47  ;;  %v1929_v49 = vld [vmem:[%s2554_s4] sm:$0xff]  }
 0xbf7   :  { %1829 = vmatprep.subr.bf16.mxu0 %v1929_v49 }
 0xbf8   :  { %1969 = vpow2.f32 %v1655_v52 }
 0xc00   :  { %v1968_v51 = vpop.eup %1967 }
 0xc01   :  { %574 = vrot.lane.b32.xlu0 %v1968_v51, %s2112_s19 }
 0xc02   :  { %v1970_v53 = vpop.eup %1969 }
 0xc03   :  { %v568_v55 = vadd.f32 1.0, %v1970_v53 }
 0xc05   :  { %1971 = vrcp.f32 %v568_v55 }
 0xc0f   :  { %v1972_v60 = vpop.eup %1971 }
 0xc10   :  { %v572_v57 = vmul.f32 %v1972_v60, %v502_v39 }
 0xc73   :  { %v575_v61 = vpop.permute.xlu0 %574 }
 0xc74   :  { %v577_v62 = vmul.f32 %v1972_v60, %v575_v61 }
 0xc76   :  { %579 = vrot.lane.b32.xlu1 %v577_v62, %s2117_s3 }
 0xce8   :  { %v580_v63 = vpop.permute.xlu1 %579 }
 0xce9   :  { %v582_v1 = vadd.f32 %v580_v63, %v572_v57  ;;  %v2382_v63 = vld [vmem:[%s2555_s5] sm:$0xff]  }
 0xceb   :  { %1973 = vtanh.f32 %v582_v1 }
 0xcf5   :  { %v1974_v3 = vpop.eup %1973 }
 0xcf6   :  { %585 = vrot.lane.b32.xlu0 %v1974_v3, %s2112_s19 }
 0xd68   :  { %v586_v5 = vpop.permute.xlu0 %585 }
 0xd69   :  { %v2323_v6 = vmul.f32 %v1972_v60, %v586_v5 }
 0xd6b   :  { %v597_v10 = vpack.c.bf16 %v2323_v6, %v2323_v6 }
 0xd6d   :  { %599 = vrot.lane.b32.xlu1 %v597_v10, %s2117_s3 }
 0xddf   :  { %v600_v11 = vpop.permute.xlu1 %599 }
 0xde0   :  { %1810 = vmatmul.mubr.msk.bf16.vlgmr.msra.gmra.mrb[12].mxu1 %vm103_vm1, %v600_v11 }
 0xde1   :  { %1822 = vmatpush3.bf16.msra.mxu1 %v2192_v2  ;;  %1825 = vmatprep.mubr.msk.bf16.mxu1 %vm2115_vm0, %v2114_v0 }
 0xde2   :  { %1823 = vmatprep.subr.bf16.mxu1 %v2114_v0 }
 0xde5   :  { %1824 = vmatpush3.bf16.msra.mxu1 %v2201_v4 }
 0xde6   :  { %1841 = vmatprep.subr.bf16.mxu1 %v2114_v0 }
 0xeb3   :  { %v638_v13 = vpop.f32.mrb[12].mxu1 }
 0xeb4   :  { %v644_v15 = vadd.f32 %v638_v13, %v170_v12  ;;  %v1811_v16 = vpop.f32.mrb[13].mxu1 }
 0xeb5   :  { %v641_v9 = vpop.f32.mrb[14].mxu1 }
 0xeb6   :  { %1975 = vtanh.f32 %v644_v15  ;;  %v1812_v17 = vpop.f32.mrb[15].mxu1  ;;  %v1657_v2 = vmul.f32 -1.442695, %v644_v15 }
 0xeb8   :  { %1977 = vpow2.f32 %v1657_v2 }
 0xec0   :  { %v1976_v18 = vpop.eup %1975 }
 0xec1   :  { %654 = vrot.lane.b32.xlu0 %v1976_v18, %s2112_s19  ;;  %v2419_v18 = vld [vmem:[%s2556_s6] ss:$0 sm:$0xff] }
 0xec2   :  { %v1978_v19 = vpop.eup %1977 }
 0xec3   :  { %v648_v20 = vadd.f32 1.0, %v1978_v19 }
 0xec5   :  { %1979 = vrcp.f32 %v648_v20 }
 0xecf   :  { %v1980_v4 = vpop.eup %1979 }
 0xed0   :  { %v652_v59 = vmul.f32 %v1980_v4, %v582_v1  ;;  %v2390_v1 = vld [vmem:[%s2555_s5 + $0x8] sm:$0xff]  }
 0xf33   :  { %v655_v22 = vpop.permute.xlu0 %654 }
 0xf34   :  { %v657_v23 = vmul.f32 %v1980_v4, %v655_v22 }
 0xf36   :  { %659 = vrot.lane.b32.xlu1 %v657_v23, %s2117_s3 }
 0xfa8   :  { %v660_v24 = vpop.permute.xlu1 %659 }
 0xfa9   :  { %v662_v25 = vadd.f32 %v660_v24, %v652_v59 }
 0xfab   :  { %1981 = vtanh.f32 %v662_v25 }
 0xfb5   :  { %v1982_v26 = vpop.eup %1981 }
 0xfb6   :  { %665 = vrot.lane.b32.xlu0 %v1982_v26, %s2112_s19 }
0x1028   :  { %v666_v27 = vpop.permute.xlu0 %665 }
0x1029   :  { %v2340_v28 = vmul.f32 %v1980_v4, %v666_v27 }
0x102b   :  { %v677_v29 = vpack.c.bf16 %v2340_v28, %v2340_v28 }
0x102d   :  { %679 = vrot.lane.b32.xlu1 %v677_v29, %s2117_s3 }
0x109f   :  { %v680_v30 = vpop.permute.xlu1 %679 }
0x10a0   :  { %1818 = vmatmul.mubr.msk.bf16.vlgmr.msra.gmra.mrb[16].mxu0 %vm103_vm1, %v680_v30 }
0x10a1   :  { %1830 = vmatpush3.bf16.msra.mxu0 %v1929_v49 }
0x1173   :  { %v718_v33 = vpop.f32.mrb[16].mxu0 }
0x1174   :  { %v724_v34 = vadd.f32 %v718_v33, %v175_v32  ;;  %v1819_v35 = vpop.f32.mrb[17].mxu0 }
0x1175   :  { %v721_v36 = vpop.f32.mrb[18].mxu0 }
0x1176   :  { %1983 = vtanh.f32 %v724_v34  ;;  %v1820_v37 = vpop.f32.mrb[19].mxu0  ;;  %v1659_v38 = vmul.f32 -1.442695, %v724_v34 }
0x1178   :  { %1985 = vpow2.f32 %v1659_v38 }
0x1180   :  { %v1984_v14 = vpop.eup %1983 }
0x1181   :  { %734 = vrot.lane.b32.xlu0 %v1984_v14, %s2112_s19 }
0x1182   :  { %v1986_v39 = vpop.eup %1985 }
0x1183   :  { %v728_v40 = vadd.f32 1.0, %v1986_v39 }
0x1185   :  { %1987 = vrcp.f32 %v728_v40 }
0x118f   :  { %v1988_v41 = vpop.eup %1987 }
0x1190   :  { %v732_v56 = vmul.f32 %v1988_v41, %v662_v25 }
0x11f3   :  { %v735_v43 = vpop.permute.xlu0 %734 }
0x11f4   :  { %v737_v44 = vmul.f32 %v1988_v41, %v735_v43 }
0x11f6   :  { %739 = vrot.lane.b32.xlu1 %v737_v44, %s2117_s3 }
0x11fa   :  { %271 = vrot.lane.b32.xlu1 %v2239_v31, %s2117_s3  ;;  %v1930_v31 = vld [vmem:[%s2554_s4 + $0x8] sm:$0xff]  }
0x11fb   :  { %1831 = vmatprep.subr.bf16.mxu0 %v1930_v31 }
0x11fc   :  { %1832 = vmatpush3.bf16.msra.mxu0 %v1930_v31 }
0x11fd   :  { %1857 = vmatprep.subr.bf16.mxu0 %v2114_v0 }
0x11fe   :  { %430 = vrot.lane.b32.xlu1 %v2290_v21, %s2117_s3 }
0x1268   :  { %v740_v45 = vpop.permute.xlu1 %739 }
0x1269   :  { %v2354_v46 = vadd.f32 %v740_v45, %v732_v56 }
0x126b   :  { %1989 = vtanh.f32 %v2354_v46 }
0x126c   :  { %v272_v47 = vpop.permute.xlu1 %271 }
0x126d   :  { %274 = vst.msk [vmem:[#allocation3] sm:$0xff] %vm103_vm1, %v272_v47 }
0x1270   :  { %v431_v48 = vpop.permute.xlu1 %430 }
0x1271   :  { %434 = vst.msk [vmem:[#allocation3 + $0x10] sm:$0xff] %vm103_vm1, %v431_v48 }
0x1274   :  { %v835_v60 = vld [vmem:[#allocation3] sm:$0xff] }
0x1275   :  { %v1990_v21 = vpop.eup %1989 }
0x1276   :  { %745 = vrot.lane.b32.xlu0 %v1990_v21, %s2112_s19 }
0x127a   :  { %350 = vrot.lane.b32.xlu0 %v2265_v54, %s2117_s3 }
0x127e   :  { %510 = vrot.lane.b32.xlu0 %v2307_v42, %s2117_s3  ;;  %v837_v42 = vld [vmem:[#allocation3 + $0x10] sm:$0xff] }
0x12e8   :  { %v746_v50 = vpop.permute.xlu0 %745 }
0x12e9   :  { %v2371_v51 = vmul.f32 %v1988_v41, %v746_v50 }
0x12eb   :  { %v757_v52 = vpack.c.bf16 %v2371_v51, %v2371_v51 }
0x12ec   :  { %v351_v53 = vpop.permute.xlu0 %350 }
0x12ed   :  { %354 = vst.msk [vmem:[#allocation3 + $0x8] sm:$0xff] %vm103_vm1, %v351_v53  ;;  %759 = vrot.lane.b32.xlu1 %v757_v52, %s2117_s3 }
0x12f0   :  { %v511_v55 = vpop.permute.xlu0 %510 }
0x12f1   :  { %514 = vst.msk [vmem:[#allocation3 + $0x18] sm:$0xff] %vm103_vm1, %v511_v55 }
0x12f4   :  { %v836_v61 = vld [vmem:[#allocation3 + $0x8] sm:$0xff] }
0x12f5   :  { %v843_v54 = vpack.c.bf16 %v836_v61, %v835_v60 }
0x12f7   :  { %1833 = vmatprep.mubr.msk.bf16.mxu0 %vm103_vm1, %v843_v54 }
0x12f8   :  { %v838_v62 = vld [vmem:[#allocation3 + $0x18] sm:$0xff] }
0x12f9   :  { %v844_v57 = vpack.c.bf16 %v838_v62, %v837_v42 }
0x12fb   :  { %1834 = vmatmul.mubr.msk.bf16.vlgmr.msra.gmra.mrb[20].mxu0 %vm103_vm1, %v844_v57 }
0x12fc   :  { %1858 = vmatpush3.bf16.msra.mxu0 %v2382_v63 }
0x12fd   :  { %1859 = vmatprep.subr.bf16.mxu0 %v2114_v0 }
0x1300   :  { %1860 = vmatpush3.bf16.msra.mxu0 %v2390_v1 }
0x1301   :  { %1873 = vmatprep.subr.bf16.mxu0 %v2114_v0 }
0x135f   :  { %v760_v3 = vpop.permute.xlu1 %759 }
0x1360   :  { %1826 = vmatmul.mubr.msk.bf16.vlgmr.msra.gmra.mrb[16].mxu1 %vm103_vm1, %v760_v3 }
0x1361   :  { %1842 = vmatpush3.bf16.msra.mxu1 %v2382_v63  ;;  %1845 = vmatprep.mubr.msk.bf16.mxu1 %vm2115_vm0, %v2114_v0 }
0x1362   :  { %1843 = vmatprep.subr.bf16.mxu1 %v2114_v0 }
0x1365   :  { %1844 = vmatpush3.bf16.msra.mxu1 %v2390_v1 }
0x1366   :  { %1849 = vmatprep.subr.bf16.mxu1 %v2114_v0 }
0x1368   :  { %1846 = vmatmul.mubr.bf16.vlgmr.msra.gmra.mrb[20].mxu1 %v2116_v7  ;;  %v178_v7 = vadd.f32 %v2274_v58, %v2229_v8 }
0x1369   :  { %1850 = vmatpush3.bf16.msra.mxu1 %v2382_v63  ;;  %1853 = vmatprep.mubr.msk.bf16.mxu1 %vm2115_vm0, %v2114_v0 }
0x136a   :  { %1851 = vmatprep.subr.bf16.mxu1 %v2114_v0 }
0x136d   :  { %1852 = vmatpush3.bf16.msra.mxu1 %v2390_v1 }
0x136e   :  { %1865 = vmatprep.subr.bf16.mxu1 %v2114_v0 }
0x13ce   :  { %v2408_v5 = vpop.f32.mrb[20].mxu0 }
0x13cf   :  { %v920_v10 = vpop.f32.mrb[21].mxu0 }
0x13d0   :  { %v2410_v11 = vpop.f32.mrb[22].mxu0  ;;  %v921_v2 = vadd.f32 %v2419_v18, %v920_v10 }
0x13d1   :  { %v2412_v12 = vpop.f32.mrb[23].mxu0 }
0x13d2   :  { %v924_v21 = vadd.f32 %v2419_v18, %v2412_v12 }
0x1433   :  { %v798_v13 = vpop.f32.mrb[16].mxu1 }
0x1434   :  { %v804_v15 = vadd.f32 %v798_v13, %v178_v7  ;;  %v1827_v16 = vpop.f32.mrb[17].mxu1 }
0x1435   :  { %v801_v9 = vpop.f32.mrb[18].mxu1 }
0x1436   :  { %v1828_v17 = vpop.f32.mrb[19].mxu1  ;;  %v1661_v35 = vmul.f32 -1.442695, %v804_v15 }
0x143b   :  { %v1006_v19 = vpop.f32.mrb[20].mxu1 }
0x143c   :  { %v1012_v20 = vadd.f32 %v1006_v19, %v921_v2  ;;  %v1847_v4 = vpop.f32.mrb[21].mxu1 }
0x143d   :  { %v1009_v22 = vpop.f32.mrb[22].mxu1 }
0x143e   :  { %1991 = vtanh.f32 %v1012_v20  ;;  %v1848_v23 = vpop.f32.mrb[23].mxu1  ;;  %v1671_v8 = vmul.f32 -1.442695, %v1012_v20 }
0x1440   :  { %1993 = vpow2.f32 %v1671_v8 }
0x1448   :  { %v1992_v59 = vpop.eup %1991 }
0x1449   :  { %1022 = vrot.lane.b32.xlu0 %v1992_v59, %s2112_s19 }
0x144a   :  { %v1994_v58 = vpop.eup %1993 }
0x144b   :  { %v1016_v24 = vadd.f32 1.0, %v1994_v58 }
0x144d   :  { %1995 = vrcp.f32 %v1016_v24 }
0x1457   :  { %v1996_v25 = vpop.eup %1995 }
0x1458   :  { %v1020_v29 = vmul.f32 0.0, %v1996_v25 }
0x14bb   :  { %v1023_v26 = vpop.permute.xlu0 %1022 }
0x14bc   :  { %v1025_v27 = vmul.f32 %v1996_v25, %v1023_v26  ;;  %v929_v26 = vadd.f32 %v2408_v5, %v2419_v18 }
0x14be   :  { %1027 = vrot.lane.b32.xlu1 %v1025_v27, %s2117_s3 }
0x1530   :  { %v1028_v30 = vpop.permute.xlu1 %1027 }
0x1531   :  { %v1030_v32 = vadd.f32 %v1028_v30, %v1020_v29 }
0x1533   :  { %1997 = vtanh.f32 %v1030_v32 }
0x1534   :  { %1999 = vtanh.f32 %v804_v15 }
0x1535   :  { %2001 = vpow2.f32 %v1661_v35 }
0x153d   :  { %v1998_v33 = vpop.eup %1997 }
0x153e   :  { %1033 = vrot.lane.b32.xlu0 %v1998_v33, %s2112_s19  ;;  %v2000_v34 = vpop.eup %1999 }
0x153f   :  { %v2002_v36 = vpop.eup %2001 }
0x1540   :  { %v808_v37 = vadd.f32 1.0, %v2002_v36 }
0x1542   :  { %814 = vrot.lane.b32.xlu0 %v2000_v34, %s2112_s19  ;;  %2003 = vrcp.f32 %v808_v37 }
0x154c   :  { %v2004_v40 = vpop.eup %2003 }
0x154d   :  { %v812_v56 = vmul.f32 %v2004_v40, %v2354_v46 }
0x15b0   :  { %v1034_v14 = vpop.permute.xlu0 %1033 }
0x15b1   :  { %v1036_v38 = vmul.f32 %v1996_v25, %v1034_v14 }
0x15b3   :  { %v1038_v39 = vpack.c.bf16 %v1036_v38, %v1036_v38 }
0x15b4   :  { %v815_v41 = vpop.permute.xlu0 %814 }
0x15b5   :  { %v817_v43 = vmul.f32 %v2004_v40, %v815_v41  ;;  %1040 = vrot.lane.b32.xlu1 %v1038_v39, %s2117_s3 }
0x15b7   :  { %819 = vrot.lane.b32.xlu0 %v817_v43, %s2117_s3 }
0x1627   :  { %v1041_v44 = vpop.permute.xlu1 %1040 }
0x1628   :  { %1854 = vmatmul.mubr.msk.bf16.vlgmr.msra.gmra.mrb[24].mxu1 %vm103_vm1, %v1041_v44 }
0x1629   :  { %v820_v45 = vpop.permute.xlu0 %819  ;;  %1866 = vmatpush3.bf16.msra.mxu1 %v2382_v63  ;;  %1869 = vmatprep.mubr.msk.bf16.mxu1 %vm2115_vm0, %v2114_v0 }
0x162a   :  { %v822_v47 = vadd.f32 %v820_v45, %v812_v56  ;;  %1867 = vmatprep.subr.bf16.mxu1 %v2114_v0 }
0x162c   :  { %2005 = vtanh.f32 %v822_v47 }
0x162d   :  { %1868 = vmatpush3.bf16.msra.mxu1 %v2390_v1 }
0x162e   :  { %1881 = vmatprep.subr.bf16.mxu1 %v2114_v0 }
0x1636   :  { %v2006_v48 = vpop.eup %2005 }
0x1637   :  { %825 = vrot.lane.b32.xlu0 %v2006_v48, %s2112_s19  ;;  %v932_v48 = vadd.f32 %v2410_v11, %v2419_v18 }
0x163b   :  { %590 = vrot.lane.b32.xlu0 %v2323_v6, %s2117_s3 }
0x163f   :  { %750 = vrot.lane.b32.xlu0 %v2371_v51, %s2117_s3 }
0x16a9   :  { %v826_v46 = vpop.permute.xlu0 %825 }
0x16aa   :  { %v828_v13 = vmul.f32 %v2004_v40, %v826_v46 }
0x16ad   :  { %v591_v49 = vpop.permute.xlu0 %590 }
0x16ae   :  { %594 = vst.msk [vmem:[#allocation3 + $0x20] sm:$0xff] %vm103_vm1, %v591_v49 }
0x16b1   :  { %v751_v31 = vpop.permute.xlu0 %750 }
0x16b2   :  { %754 = vst.msk [vmem:[#allocation3 + $0x30] sm:$0xff] %vm103_vm1, %v751_v31 }
0x16b5   :  { %v839_v19 = vld [vmem:[#allocation3 + $0x20] sm:$0xff] }
0x16fb   :  { %v1079_v50 = vpop.f32.mrb[24].mxu1 }
0x16fc   :  { %v1085_v52 = vadd.f32 %v1079_v50, %v924_v21  ;;  %v1855_v53 = vpop.f32.mrb[25].mxu1 }
0x16fd   :  { %v1082_v55 = vpop.f32.mrb[26].mxu1 }
0x16fe   :  { %2007 = vtanh.f32 %v1085_v52  ;;  %v1856_v60 = vpop.f32.mrb[27].mxu1  ;;  %v1673_v51 = vmul.f32 -1.442695, %v1085_v52 }
0x1700   :  { %2009 = vpow2.f32 %v1673_v51 }
0x1708   :  { %v2008_v6 = vpop.eup %2007 }
0x1709   :  { %1095 = vrot.lane.b32.xlu1 %v2008_v6, %s2112_s19 }
0x170a   :  { %v2010_v61 = vpop.eup %2009 }
0x170b   :  { %v1089_v54 = vadd.f32 1.0, %v2010_v61 }
0x170d   :  { %2011 = vrcp.f32 %v1089_v54 }
0x1717   :  { %v2012_v42 = vpop.eup %2011 }
0x1718   :  { %v1093_v3 = vmul.f32 %v2012_v42, %v1030_v32 }
0x177b   :  { %v1096_v62 = vpop.permute.xlu1 %1095 }
0x177c   :  { %v1098_v57 = vmul.f32 %v2012_v42, %v1096_v62 }
0x177e   :  { %1100 = vrot.lane.b32.xlu1 %v1098_v57, %s2117_s3 }
0x17f0   :  { %v1101_v10 = vpop.permute.xlu1 %1100 }
0x17f1   :  { %v1103_v12 = vadd.f32 %v1101_v10, %v1093_v3 }
0x17f3   :  { %2013 = vtanh.f32 %v1103_v12 }
0x17fd   :  { %v2014_v7 = vpop.eup %2013 }
0x17fe   :  { %1106 = vrot.lane.b32.xlu1 %v2014_v7, %s2112_s19 }
0x1802   :  { %670 = vrot.lane.b32.xlu1 %v2340_v28, %s2117_s3  ;;  %v841_v28 = vld [vmem:[#allocation3 + $0x30] sm:$0xff] }
0x1806   :  { %830 = vrot.lane.b32.xlu1 %v828_v13, %s2117_s3 }
0x1870   :  { %v1107_v15 = vpop.permute.xlu1 %1106 }
0x1871   :  { %v1109_v16 = vmul.f32 %v2012_v42, %v1107_v15 }
0x1873   :  { %v1111_v9 = vpack.c.bf16 %v1109_v16, %v1109_v16 }
0x1874   :  { %v671_v17 = vpop.permute.xlu1 %670 }
0x1875   :  { %674 = vst.msk [vmem:[#allocation3 + $0x28] sm:$0xff] %vm103_vm1, %v671_v17  ;;  %1113 = vrot.lane.b32.xlu0 %v1111_v9, %s2117_s3 }
0x1878   :  { %v831_v2 = vpop.permute.xlu1 %830 }
0x1879   :  { %834 = vst.msk [vmem:[#allocation3 + $0x38] sm:$0xff] %vm103_vm1, %v831_v2 }
0x187c   :  { %v840_v20 = vld [vmem:[#allocation3 + $0x28] sm:$0xff] }
0x187d   :  { %v845_v4 = vpack.c.bf16 %v840_v20, %v839_v19 }
0x187f   :  { %1837 = vmatprep.mubr.msk.bf16.mxu0 %vm103_vm1, %v845_v4 }
0x1880   :  { %v842_v22 = vld [vmem:[#allocation3 + $0x38] sm:$0xff] }
0x1881   :  { %v846_v23 = vpack.c.bf16 %v842_v22, %v841_v28 }
0x1883   :  { %1838 = vmatmul.mubr.msk.bf16.gmra.mrb[24].mxu0 %vm103_vm1, %v846_v23 }
0x1884   :  { %1861 = vmatprep.mubr.msk.bf16.mxu0 %vm2115_vm0, %v2114_v0 }
0x18e7   :  { %v1114_v59 = vpop.permute.xlu0 %1113 }
0x18e8   :  { %1862 = vmatmul.mubr.msk.bf16.vlgmr.msra.gmra.mrb[28].mxu0 %vm103_vm1, %v1114_v59 }
0x18e9   :  { %1874 = vmatpush3.bf16.msra.mxu0 %v2382_v63  ;;  %1877 = vmatprep.mubr.msk.bf16.mxu0 %vm2115_vm0, %v2114_v0 }
0x18ea   :  { %1875 = vmatprep.subr.bf16.mxu0 %v2114_v0 }
0x18ed   :  { %1876 = vmatpush3.bf16.msra.mxu0 %v2390_v1 }
0x18ee   :  { %1889 = vmatprep.subr.bf16.mxu0 %v2114_v0 }
0x1956   :  { %v2465_v8 = vpop.f32.mrb[24].mxu0 }
0x1957   :  { %v2467_v58 = vpop.f32.mrb[25].mxu0 }
0x1958   :  { %v2469_v24 = vpop.f32.mrb[26].mxu0  ;;  %v937_v7 = vadd.f32 %v2419_v18, %v2467_v58 }
0x1959   :  { %v2471_v25 = vpop.f32.mrb[27].mxu0 }
0x19bb   :  { %v1152_v27 = vpop.f32.mrb[28].mxu0 }
0x19bc   :  { %v1158_v29 = vadd.f32 %v1152_v27, %v929_v26  ;;  %v1863_v30 = vpop.f32.mrb[29].mxu0 }
0x19bd   :  { %v1155_v32 = vpop.f32.mrb[30].mxu0 }
0x19be   :  { %2015 = vtanh.f32 %v1158_v29  ;;  %v1864_v33 = vpop.f32.mrb[31].mxu0  ;;  %v1675_v35 = vmul.f32 -1.442695, %v1158_v29 }
0x19c0   :  { %2017 = vpow2.f32 %v1675_v35 }
0x19c8   :  { %v2016_v34 = vpop.eup %2015 }
0x19c9   :  { %1168 = vrot.lane.b32.xlu1 %v2016_v34, %s2112_s19  ;;  %v940_v34 = vadd.f32 %v2419_v18, %v2471_v25 }
0x19ca   :  { %v2018_v36 = vpop.eup %2017 }
0x19cb   :  { %v1162_v37 = vadd.f32 1.0, %v2018_v36 }
0x19cd   :  { %2019 = vrcp.f32 %v1162_v37 }
0x19d7   :  { %v2020_v14 = vpop.eup %2019 }
0x19d8   :  { %v1166_v5 = vmul.f32 %v2020_v14, %v1103_v12 }
0x1a3b   :  { %v1169_v38 = vpop.permute.xlu1 %1168 }
0x1a3c   :  { %v1171_v39 = vmul.f32 %v2020_v14, %v1169_v38 }
0x1a3e   :  { %1173 = vrot.lane.b32.xlu0 %v1171_v39, %s2117_s3 }
0x1ab0   :  { %v1174_v40 = vpop.permute.xlu0 %1173 }
0x1ab1   :  { %v1176_v41 = vadd.f32 %v1174_v40, %v1166_v5 }
0x1ab3   :  { %2021 = vtanh.f32 %v1176_v41 }
0x1abd   :  { %v2022_v43 = vpop.eup %2021 }
0x1abe   :  { %1179 = vrot.lane.b32.xlu1 %v2022_v43, %s2112_s19 }
0x1b30   :  { %v1180_v44 = vpop.permute.xlu1 %1179 }
0x1b31   :  { %v1182_v56 = vmul.f32 %v2020_v14, %v1180_v44 }
0x1b33   :  { %v1184_v45 = vpack.c.bf16 %v1182_v56, %v1182_v56 }
0x1b35   :  { %1186 = vrot.lane.b32.xlu0 %v1184_v45, %s2117_s3 }
0x1ba7   :  { %v1187_v47 = vpop.permute.xlu0 %1186 }
0x1ba8   :  { %1870 = vmatmul.mubr.msk.bf16.vlgmr.msra.gmra.mrb[28].mxu1 %vm103_vm1, %v1187_v47 }
0x1ba9   :  { %1882 = vmatpush3.bf16.msra.mxu1 %v2382_v63  ;;  %1885 = vmatprep.mubr.msk.bf16.mxu1 %vm2115_vm0, %v2114_v0 }
0x1baa   :  { %1883 = vmatprep.subr.bf16.mxu1 %v2114_v0 }
0x1bad   :  { %1884 = vmatpush3.bf16.msra.mxu1 %v2390_v1 }
0x1bae   :  { %1897 = vmatprep.subr.bf16.mxu1 %v2114_v0 }
0x1c7b   :  { %v1225_v46 = vpop.f32.mrb[28].mxu1 }
0x1c7c   :  { %v1231_v49 = vadd.f32 %v1225_v46, %v932_v48  ;;  %v1871_v31 = vpop.f32.mrb[29].mxu1 }
0x1c7d   :  { %v1228_v21 = vpop.f32.mrb[30].mxu1  ;;  %v945_v31 = vadd.f32 %v2465_v8, %v2419_v18 }
0x1c7e   :  { %2023 = vtanh.f32 %v1231_v49  ;;  %v1872_v50 = vpop.f32.mrb[31].mxu1  ;;  %v1677_v53 = vmul.f32 -1.442695, %v1231_v49 }
0x1c80   :  { %2025 = vpow2.f32 %v1677_v53 }
0x1c88   :  { %v2024_v52 = vpop.eup %2023 }
0x1c89   :  { %1241 = vrot.lane.b32.xlu1 %v2024_v52, %s2112_s19 }
0x1c8a   :  { %v2026_v55 = vpop.eup %2025 }
0x1c8b   :  { %v1235_v60 = vadd.f32 1.0, %v2026_v55 }
0x1c8d   :  { %2027 = vrcp.f32 %v1235_v60 }
0x1c97   :  { %v2028_v6 = vpop.eup %2027 }
0x1c98   :  { %v1239_v11 = vmul.f32 %v2028_v6, %v1176_v41 }
0x1cfb   :  { %v1242_v51 = vpop.permute.xlu1 %1241 }
0x1cfc   :  { %v1244_v61 = vmul.f32 %v2028_v6, %v1242_v51 }
0x1cfe   :  { %1246 = vrot.lane.b32.xlu0 %v1244_v61, %s2117_s3 }
0x1d70   :  { %v1247_v54 = vpop.permute.xlu0 %1246 }
0x1d71   :  { %v1249_v42 = vadd.f32 %v1247_v54, %v1239_v11 }
0x1d73   :  { %2029 = vtanh.f32 %v1249_v42 }
0x1d7d   :  { %v2030_v62 = vpop.eup %2029 }
0x1d7e   :  { %1252 = vrot.lane.b32.xlu1 %v2030_v62, %s2112_s19 }
0x1df0   :  { %v1253_v57 = vpop.permute.xlu1 %1252 }
0x1df1   :  { %v1255_v3 = vmul.f32 %v2028_v6, %v1253_v57 }
0x1df3   :  { %v1257_v10 = vpack.c.bf16 %v1255_v3, %v1255_v3 }
0x1df5   :  { %1259 = vrot.lane.b32.xlu0 %v1257_v10, %s2117_s3 }
0x1e67   :  { %v1260_v12 = vpop.permute.xlu0 %1259 }
0x1e68   :  { %1878 = vmatmul.mubr.msk.bf16.vlgmr.msra.gmra.mrb[32].mxu0 %vm103_vm1, %v1260_v12 }
0x1e69   :  { %1890 = vmatpush3.bf16.msra.mxu0 %v2382_v63  ;;  %1893 = vmatprep.mubr.msk.bf16.mxu0 %vm2115_vm0, %v2114_v0 }
0x1e6a   :  { %1891 = vmatprep.subr.bf16.mxu0 %v2114_v0 }
0x1e6d   :  { %1892 = vmatpush3.bf16.msra.mxu0 %v2390_v1 }
0x1e6e   :  { %1905 = vmatprep.subr.bf16.mxu0 %v2114_v0 }
0x1f3b   :  { %v1298_v13 = vpop.f32.mrb[32].mxu0 }
0x1f3c   :  { %v1304_v15 = vadd.f32 %v1298_v13, %v937_v7  ;;  %v1879_v16 = vpop.f32.mrb[33].mxu0 }
0x1f3d   :  { %v1301_v9 = vpop.f32.mrb[34].mxu0 }
0x1f3e   :  { %2031 = vtanh.f32 %v1304_v15  ;;  %v1880_v17 = vpop.f32.mrb[35].mxu0  ;;  %v1679_v19 = vmul.f32 -1.442695, %v1304_v15  ;;  %v948_v15 = vadd.f32 %v2469_v24, %v2419_v18 }
0x1f40   :  { %2033 = vpow2.f32 %v1679_v19 }
0x1f48   :  { %v2032_v2 = vpop.eup %2031 }
0x1f49   :  { %1314 = vrot.lane.b32.xlu1 %v2032_v2, %s2112_s19 }
0x1f4a   :  { %v2034_v20 = vpop.eup %2033 }
0x1f4b   :  { %v1308_v4 = vadd.f32 1.0, %v2034_v20 }
0x1f4d   :  { %2035 = vrcp.f32 %v1308_v4 }
0x1f57   :  { %v2036_v28 = vpop.eup %2035 }
0x1f58   :  { %v1312_v59 = vmul.f32 %v2036_v28, %v1249_v42 }
0x1fbb   :  { %v1315_v22 = vpop.permute.xlu1 %1314 }
0x1fbc   :  { %v1317_v23 = vmul.f32 %v2036_v28, %v1315_v22 }
0x1fbe   :  { %1319 = vrot.lane.b32.xlu0 %v1317_v23, %s2117_s3 }
0x2030   :  { %v1320_v58 = vpop.permute.xlu0 %1319 }
0x2031   :  { %v1322_v26 = vadd.f32 %v1320_v58, %v1312_v59 }
0x2033   :  { %2037 = vtanh.f32 %v1322_v26 }
0x203d   :  { %v2038_v27 = vpop.eup %2037 }
0x203e   :  { %1325 = vrot.lane.b32.xlu1 %v2038_v27, %s2112_s19  ;;  %v1933_v27 = vld [vmem:[#allocation4] sm:$0xff]  }
0x20b0   :  { %v1326_v29 = vpop.permute.xlu1 %1325 }
0x20b1   :  { %v1328_v30 = vmul.f32 %v2036_v28, %v1326_v29  ;;  %v1934_v29 = vld [vmem:[#allocation4 + $0x8] sm:$0xff]  }
0x20b3   :  { %v1330_v32 = vpack.c.bf16 %v1328_v30, %v1328_v30 }
0x20b5   :  { %1332 = vrot.lane.b32.xlu0 %v1330_v32, %s2117_s3 }
0x2127   :  { %v1333_v33 = vpop.permute.xlu0 %1332 }
0x2128   :  { %1886 = vmatmul.mubr.msk.bf16.vlgmr.msra.gmra.mrb[32].mxu1 %vm103_vm1, %v1333_v33 }
0x2129   :  { %1898 = vmatpush3.bf16.msra.mxu1 %v2382_v63  ;;  %1901 = vmatprep.mubr.msk.bf16.mxu1 %vm2115_vm0, %v2114_v0 }
0x212a   :  { %1899 = vmatprep.subr.bf16.mxu1 %v2114_v0 }
0x212d   :  { %1900 = vmatpush3.bf16.msra.mxu1 %v2390_v1 }
0x21fb   :  { %v1371_v35 = vpop.f32.mrb[32].mxu1 }
0x21fc   :  { %v1377_v36 = vadd.f32 %v1371_v35, %v940_v34  ;;  %v1887_v37 = vpop.f32.mrb[33].mxu1 }
0x21fd   :  { %v1374_v14 = vpop.f32.mrb[34].mxu1 }
0x21fe   :  { %2039 = vtanh.f32 %v1377_v36  ;;  %v1888_v38 = vpop.f32.mrb[35].mxu1  ;;  %v1681_v63 = vmul.f32 -1.442695, %v1377_v36  ;;  %v1686_v36 = vld [vmem:[%s2558_s8] ss:$0 sm:$0xff] }
0x2200   :  { %2041 = vpow2.f32 %v1681_v63 }
0x2208   :  { %v2040_v39 = vpop.eup %2039 }
0x2209   :  { %1387 = vrot.lane.b32.xlu1 %v2040_v39, %s2112_s19 }
0x220a   :  { %v2042_v5 = vpop.eup %2041 }
0x220b   :  { %v1381_v40 = vadd.f32 1.0, %v2042_v5 }
0x220d   :  { %2043 = vrcp.f32 %v1381_v40 }
0x2217   :  { %v2044_v41 = vpop.eup %2043 }
0x2218   :  { %v1385_v25 = vmul.f32 %v2044_v41, %v1322_v26 }
0x227b   :  { %v1388_v43 = vpop.permute.xlu1 %1387 }
0x227c   :  { %v1390_v1 = vmul.f32 %v2044_v41, %v1388_v43 }
0x227e   :  { %1392 = vrot.lane.b32.xlu0 %v1390_v1, %s2117_s3 }
0x22f0   :  { %v1393_v44 = vpop.permute.xlu0 %1392 }
0x22f1   :  { %v1395_v56 = vadd.f32 %v1393_v44, %v1385_v25 }
0x22f3   :  { %2045 = vtanh.f32 %v1395_v56 }
0x22fd   :  { %v2046_v45 = vpop.eup %2045 }
0x22fe   :  { %1398 = vrot.lane.b32.xlu1 %v2046_v45, %s2112_s19 }
0x2370   :  { %v1399_v47 = vpop.permute.xlu1 %1398 }
0x2371   :  { %v1401_v48 = vmul.f32 %v2044_v41, %v1399_v47 }
0x2373   :  { %v1403_v46 = vpack.c.bf16 %v1401_v48, %v1401_v48 }
0x2375   :  { %1405 = vrot.lane.b32.xlu0 %v1403_v46, %s2117_s3 }
0x23e7   :  { %v1406_v49 = vpop.permute.xlu0 %1405 }
0x23e8   :  { %1894 = vmatmul.mubr.msk.bf16.vlgmr.msra.gmra.mrb[36].mxu0 %vm103_vm1, %v1406_v49 }
0x23e9   :  { %1909 = vmatprep.mubr.msk.bf16.mxu0 %vm2115_vm0, %v2114_v0  ;;  %1906 = vmatpush3.bf16.msra.mxu0 %v1933_v27 }
0x23ea   :  { %1907 = vmatprep.subr.bf16.mxu0 %v2114_v0 }
0x23ed   :  { %1908 = vmatpush3.bf16.msra.mxu0 %v1934_v29 }
0x24bb   :  { %v1444_v21 = vpop.f32.mrb[36].mxu0 }
0x24bc   :  { %v1450_v50 = vadd.f32 %v1444_v21, %v945_v31  ;;  %v1895_v52 = vpop.f32.mrb[37].mxu0 }
0x24bd   :  { %v1447_v53 = vpop.f32.mrb[38].mxu0 }
0x24be   :  { %2047 = vtanh.f32 %v1450_v50  ;;  %v1896_v55 = vpop.f32.mrb[39].mxu0  ;;  %v1683_v6 = vmul.f32 -1.442695, %v1450_v50 }
0x24c0   :  { %2049 = vpow2.f32 %v1683_v6 }
0x24c8   :  { %v2048_v60 = vpop.eup %2047 }
0x24c9   :  { %1460 = vrot.lane.b32.xlu1 %v2048_v60, %s2112_s19 }
0x24ca   :  { %v2050_v51 = vpop.eup %2049 }
0x24cb   :  { %v1454_v61 = vadd.f32 1.0, %v2050_v51 }
0x24cd   :  { %2051 = vrcp.f32 %v1454_v61 }
0x24d7   :  { %v2052_v11 = vpop.eup %2051 }
0x24d8   :  { %v1458_v8 = vmul.f32 %v2052_v11, %v1395_v56 }
0x253b   :  { %v1461_v54 = vpop.permute.xlu1 %1460 }
0x253c   :  { %v1463_v42 = vmul.f32 %v2052_v11, %v1461_v54 }
0x253e   :  { %1465 = vrot.lane.b32.xlu0 %v1463_v42, %s2117_s3 }
0x25b0   :  { %v1466_v62 = vpop.permute.xlu0 %1465 }
0x25b1   :  { %v1468_v57 = vadd.f32 %v1466_v62, %v1458_v8 }
0x25b3   :  { %2053 = vtanh.f32 %v1468_v57 }
0x25bd   :  { %v2054_v3 = vpop.eup %2053 }
0x25be   :  { %1471 = vrot.lane.b32.xlu1 %v2054_v3, %s2112_s19 }
0x2630   :  { %v1472_v10 = vpop.permute.xlu1 %1471 }
0x2631   :  { %v1474_v12 = vmul.f32 %v2052_v11, %v1472_v10 }
0x2633   :  { %v1476_v7 = vpack.c.bf16 %v1474_v12, %v1474_v12 }
0x2635   :  { %1478 = vrot.lane.b32.xlu0 %v1476_v7, %s2117_s3 }
0x26a7   :  { %v1479_v13 = vpop.permute.xlu0 %1478 }
0x26a8   :  { %1902 = vmatmul.mubr.msk.bf16.vlgmr.msra.gmra.mrb[36].mxu1 %vm103_vm1, %v1479_v13 }
0x277b   :  { %v1517_v16 = vpop.f32.mrb[36].mxu1 }
0x277c   :  { %v1523_v9 = vadd.f32 %v1517_v16, %v948_v15  ;;  %v1903_v17 = vpop.f32.mrb[37].mxu1 }
0x277d   :  { %v1520_v2 = vpop.f32.mrb[38].mxu1 }
0x277e   :  { %2055 = vtanh.f32 %v1523_v9  ;;  %v1904_v19 = vpop.f32.mrb[39].mxu1  ;;  %v1685_v4 = vmul.f32 -1.442695, %v1523_v9 }
0x2780   :  { %2057 = vpow2.f32 %v1685_v4 }
0x2788   :  { %v2056_v20 = vpop.eup %2055 }
0x2789   :  { %1533 = vrot.lane.b32.xlu1 %v2056_v20, %s2112_s19 }
0x278a   :  { %v2058_v28 = vpop.eup %2057 }
0x278b   :  { %v1527_v22 = vadd.f32 1.0, %v2058_v28 }
0x278d   :  { %2059 = vrcp.f32 %v1527_v22 }
0x2797   :  { %v2060_v23 = vpop.eup %2059 }
0x2798   :  { %v1531_v18 = vmul.f32 %v2060_v23, %v1468_v57 }
0x27fb   :  { %v1534_v59 = vpop.permute.xlu1 %1533 }
0x27fc   :  { %v1536_v58 = vmul.f32 %v2060_v23, %v1534_v59 }
0x27fe   :  { %1538 = vrot.lane.b32.xlu0 %v1536_v58, %s2117_s3 }
0x2870   :  { %v1539_v24 = vpop.permute.xlu0 %1538 }
0x2871   :  { %v1541_v26 = vadd.f32 %v1539_v24, %v1531_v18 }
0x2873   :  { %2061 = vtanh.f32 %v1541_v26 }
0x287d   :  { %v2062_v30 = vpop.eup %2061 }
0x287e   :  { %1544 = vrot.lane.b32.xlu1 %v2062_v30, %s2112_s19  ;;  %s2085_s19 = scalar_lea.vmem %s1626_s7, 128 }
0x287f   :  { %p2086_p8 = scmp.ne.s32.totalorder %s1626_s7, %s2085_s19  ;;  %p2091_p10 = scmp.lt.s32.totalorder %s2085_s19, %s2085_s19 }
0x2881   :  { %p2092_p11 = por %p2091_p10, %p2090_p9 }
0x2883   :  { %p2093_p12 = pnand %p2092_p11, %p2086_p8 }
0x28f0   :  { %v1545_v32 = vpop.permute.xlu1 %1544 }
0x28f1   :  { %v1547_v33 = vmul.f32 %v2060_v23, %v1545_v32 }
0x28f3   :  { %v1548_v34 = vpack.c.bf16 %v1547_v33, %v1547_v33 }
0x28f5   :  { %1561 = vrot.lane.b32.xlu0 %v1548_v34, %s2117_s3 }
0x2967   :  { %v1562_v35 = vpop.permute.xlu0 %1561 }
0x2968   :  { %1910 = vmatmul.mubr.msk.bf16.vlgmr.msra.gmra.mrb[40].mxu0 %vm103_vm1, %v1562_v35 }
0x2a3b   :  { %v1612_v37 = vpop.f32.mrb[40].mxu0 }
0x2a3c   :  { %v1613_v0 = vadd.f32 %v1686_v36, %v1612_v37  ;;  %v1911_v14 = vpop.f32.mrb[41].mxu0 }
0x2a3d   :  { %v1615_v38 = vpop.f32.mrb[42].mxu0 }
0x2a3e   :  { %1618 = vst [vmem:[#allocation7] sm:$0xff] %v1613_v0  ;;  %v1912_v39 = vpop.f32.mrb[43].mxu0 }
0x2a3f   :  { %2096 = shalt.err (!%p2093_p12)
}
0x2a40   :  { %s2097_s8 = scalar_lea.hbm %s2559_s9, 128 }
0x2a41   :  { %p2098_p13 = scmp.ne.s32.totalorder %s2559_s9, %s2097_s8  ;;  %p2101_p0 = scmp.lt.u32.totalorder %s2097_s8, %s2559_s9 }
0x2a43   :  { %p2103_p1 = pnand %p2101_p0, %p2098_p13 }
0x2a45   :  { %2106 = shalt.err (!%p2103_p1)
}
0x2a46   :  { %1628 = dma.vmem_to_hbm [thread:$0]  %s1626_s7, 128, %s2559_s9, [#allocation6]  }
0x2a47   :  { %2109 = dma.done.wait [#allocation6], 128  }
0x2a48   :  { %2110 = vsyncadd [#allocation6], 4294967168 }
0x2a49   :  { %1632 = vsyncpa [#allocation5], 1 }
0x2a4a   :  { %1633 = vsyncpa [#allocation6], 1 }

</bundles_post_ra>
